<compile_context>
chip_gen: v6e
topology: v6e:2x2x1
jax: 0.10.0
libtpu: 0.0.40
codegen_flags: <defaults>
</compile_context>

<pallas_src>
import jax
import jax.numpy as jnp
from jax import lax
from jax.experimental import pallas as pl
from jax.experimental.pallas import tpu as pltpu


def _sigmoid(x):
    # tanh-based sigmoid: lowers to the EUP tanh unit; numerically stable.
    return 0.5 * (jnp.tanh(0.5 * x) + 1.0)


def gru_kernel(x_ref, mask_ref, h0_ref,
               we_ref, be_ref, wi_ref, bi_ref, wh_ref, bhn_ref,
               wfc_ref, bfc_ref, out_ref, gi_ref):
    T, Bt, C = x_ref.shape
    H = h0_ref.shape[-1]
    H2 = 2 * H

    # ---- embed + ReLU for all timesteps in one MXU matmul (M = T*Bt) ----
    # C is padded to a multiple of 128 in the wrapper -> reshape is a pure relabel.
    x2d = x_ref[...].reshape(T * Bt, C).astype(jnp.bfloat16)
    emb = jnp.dot(x2d, we_ref[...], preferred_element_type=jnp.float32) + be_ref[...]
    emb = jnp.maximum(emb, 0.0)                                          # (T*Bt, V)

    # ---- hoisted input-side gate projections, staged in VMEM scratch ----
    # 2-D (T*Bt, 3H) staging avoids any 3-D reshape; the recurrence slices rows.
    gi_ref[...] = (jnp.dot(emb.astype(jnp.bfloat16), wi_ref[...],
                           preferred_element_type=jnp.float32) + bi_ref[...])

    wh = wh_ref[...]           # (H, 3H) bf16, resident
    bhn = bhn_ref[...]         # (1, H)  b_hn only (b_hr/b_hz folded into bi)

    def step(t, carry):
        h, acc = carry
        gh = jnp.dot(h.astype(jnp.bfloat16), wh,
                     preferred_element_type=jnp.float32)                 # (Bt, 3H)
        off = pl.multiple_of(t * Bt, Bt)
        g = gi_ref[pl.ds(off, Bt), :]                                    # (Bt, 3H)
        rz = _sigmoid(g[:, :H2] + gh[:, :H2])   # fused r|z -> one EUP push per step
        r = rz[:, :H]
        z = rz[:, H:H2]
        n = jnp.tanh(g[:, H2:] + r * (gh[:, H2:] + bhn))
        h_new = (1.0 - z) * n + z * h                                    # (Bt, H) fp32
        acc = acc + h_new * mask_ref[t]          # masked time pooling, fused
        return h_new, acc

    h0 = h0_ref[...]                                                     # (Bt, H)
    acc0 = jnp.zeros((Bt, H), jnp.float32)
    _, acc = lax.fori_loop(0, T, step, (h0, acc0), unroll=True)

    # TODO(synk): nn.Dropout has no effect at inference; treated as identity here.

    # ---- final classifier + softmax over the label axis (tiny; fp32) ----
    logits = jnp.dot(acc, wfc_ref[...], preferred_element_type=jnp.float32) + bfc_ref[...]
    m = jnp.max(logits, axis=-1, keepdims=True)
    p = jnp.exp(logits - m)
    out_ref[...] = p * pl.reciprocal(jnp.sum(p, axis=-1, keepdims=True), approx=False)


def _default_batch_tile(B):
    """grid=1 on single-TC chips (v5e/v6e); split batch across the 2 TCs on v7x."""
    kind = ""
    try:
        kind = jax.devices()[0].device_kind.lower()
    except Exception:
        pass
    if "v7" in kind:
        half = B // 2
        if B % 2 == 0 and half % 8 == 0:
            return half
    return B


def gru_forward(x, mask, h0, we, be, wi, bi, wh, bh, wfc, bfc, *, bt=None):
    """x: (T,B,C) f32, mask: (T,B), h0: (B,H) f32. Returns (B, n_labels) f32 softmax."""
    T, B, C = x.shape
    V = we.shape[1]
    H = h0.shape[1]
    L = wfc.shape[1]
    assert V == H, "module requires visit_size == hidden_size (h0 construction)"
    if bt is None:
        bt = _default_batch_tile(B)
    assert B % bt == 0 and bt % 8 == 0, (B, bt)

    # Pad the code axis to a multiple of 128 so in-kernel reshapes are lane-dense
    # relabels. Zero-padded x columns / W_embed rows contribute nothing.
    Cp = ((C + 127) // 128) * 128
    if Cp != C:
        x = jnp.pad(x, ((0, 0), (0, 0), (0, Cp - C)))
        we = jnp.pad(we, ((0, Cp - C), (0, 0)))

    # bf16 MXU feeds; accumulation stays fp32 inside the kernel.
    x = x.astype(jnp.float32)
    we_b = we.astype(jnp.bfloat16)
    wi_b = wi.astype(jnp.bfloat16)
    wh_b = wh.astype(jnp.bfloat16)

    # Fold b_hr / b_hz into the input-side bias (PyTorch GRU keeps only b_hn
    # inside the r * (...) term) -> per-step bias add shrinks to the n slice.
    bi_f = bi.astype(jnp.float32) + jnp.concatenate(
        [bh[:2 * H].astype(jnp.float32), jnp.zeros((H,), jnp.float32)])
    bhn = bh[2 * H:].astype(jnp.float32).reshape(1, H)

    mask3 = mask.astype(jnp.float32).reshape(T, B, 1)
    be2 = be.astype(jnp.float32).reshape(1, V)
    bi2 = bi_f.reshape(1, 3 * H)
    bfc2 = bfc.astype(jnp.float32).reshape(1, L)

    grid_spec = pltpu.PrefetchScalarGridSpec(
        num_scalar_prefetch=0,
        grid=(B // bt,),
        in_specs=[
            pl.BlockSpec((T, bt, Cp), lambda b: (0, b, 0)),    # x    (batch-tiled)
            pl.BlockSpec((T, bt, 1), lambda b: (0, b, 0)),     # mask (batch-tiled)
            pl.BlockSpec((bt, H), lambda b: (b, 0)),           # h0   (batch-tiled)
            pl.BlockSpec((Cp, V), lambda b: (0, 0)),           # W_embed (resident, bf16)
            pl.BlockSpec((1, V), lambda b: (0, 0)),            # b_embed
            pl.BlockSpec((V, 3 * H), lambda b: (0, 0)),        # W_ih (r|z|n, bf16)
            pl.BlockSpec((1, 3 * H), lambda b: (0, 0)),        # b_ih (+ b_hr|b_hz folded)
            pl.BlockSpec((H, 3 * H), lambda b: (0, 0)),        # W_hh (r|z|n, bf16)
            pl.BlockSpec((1, H), lambda b: (0, 0)),            # b_hn
            pl.BlockSpec((H, L), lambda b: (0, 0)),            # W_fc (fp32)
            pl.BlockSpec((1, L), lambda b: (0, 0)),            # b_fc
        ],
        out_specs=pl.BlockSpec((bt, L), lambda b: (b, 0)),
        scratch_shapes=[pltpu.VMEM((T * bt, 3 * H), jnp.float32)],   # staged gi
    )

    # Note: buffers here are <1 MiB; raise vmem_limit_bytes only when growing bt/C.
    return pl.pallas_call(
        gru_kernel,
        out_shape=jax.ShapeDtypeStruct((B, L), jnp.float32),
        grid_spec=grid_spec,
        compiler_params=pltpu.CompilerParams(
            dimension_semantics=("parallel",)),
    )(x, mask3, h0, we_b, be2, wi_b, bi2, wh_b, bhn, wfc, bfc2)


def _reference(x, mask, h0, we, be, wi, bi, wh, bh, wfc, bfc):
    """Pure fp32 JAX reference matching the PyTorch module's math."""
    T, B, C = x.shape
    H = h0.shape[-1]
    emb = jnp.maximum(jnp.einsum('tbc,cv->tbv', x, we) + be, 0.0)

    def step(h, inputs):
        xt, mt = inputs
        gi = xt @ wi + bi
        gh = h @ wh + bh
        r = _sigmoid(gi[:, :H] + gh[:, :H])
        z = _sigmoid(gi[:, H:2 * H] + gh[:, H:2 * H])
        n = jnp.tanh(gi[:, 2 * H:] + r * gh[:, 2 * H:])
        h_new = (1.0 - z) * n + z * h
        return h_new, h_new * mt[:, None]

    _, masked = jax.lax.scan(step, h0, (emb, mask))
    pooled = masked.sum(0)                      # (B, H)
    logits = pooled @ wfc + bfc
    return jax.nn.softmax(logits, axis=-1)


if __name__ == "__main__":
    T, B, C = 8, 16, 64        # seq_len, batch, n_diagnosis_codes
    V = H = 32                 # visit_size == hidden_size
    L = 4                      # n_labels

    key = jax.random.PRNGKey(0)
    ks = jax.random.split(key, 11)
    x = jax.random.normal(ks[0], (T, B, C), dtype=jnp.float32)
    mask = (jax.random.uniform(ks[1], (T, B)) > 0.2).astype(jnp.float32)
    # deterministic stand-in for the module's torch.randn h0
    h0 = jax.random.normal(ks[2], (B, H), dtype=jnp.float32)

    s = 0.1
    we = jax.random.normal(ks[3], (C, V), dtype=jnp.float32) * s
    be = jax.random.normal(ks[4], (V,), dtype=jnp.float32) * s
    wi = jax.random.normal(ks[5], (V, 3 * H), dtype=jnp.float32) * s
    bi = jax.random.normal(ks[6], (3 * H,), dtype=jnp.float32) * s
    wh = jax.random.normal(ks[7], (H, 3 * H), dtype=jnp.float32) * s
    bh = jax.random.normal(ks[8], (3 * H,), dtype=jnp.float32) * s
    wfc = jax.random.normal(ks[9], (H, L), dtype=jnp.float32) * s
    bfc = jax.random.normal(ks[10], (L,), dtype=jnp.float32) * s

    logit = gru_forward(x, mask, h0, we, be, wi, bi, wh, bh, wfc, bfc)
    logit = jax.block_until_ready(logit)

    ref = _reference(x, mask, h0, we, be, wi, bi, wh, bh, wfc, bfc)
    assert logit.shape == (B, L)
    err = float(jnp.max(jnp.abs(logit - ref)))
    # bf16 MXU feeds (fp32 accumulation) -> compare against the fp32 reference
    # at a relaxed tolerance.
    assert jnp.allclose(logit, ref, atol=3e-2, rtol=3e-2), err
    assert jnp.allclose(jnp.sum(logit, axis=-1), 1.0, atol=1e-5)

    print("KERNEL_OK")
</pallas_src>

<mosaic_0001>
module attributes {stable_mosaic.version = 11 : i64} {
  func.func @gru_kernel(%arg0: i32, %arg1: memref<8x16x128xf32, #tpu.memory_space<vmem>>, %arg2: memref<8x16x1xf32, #tpu.memory_space<vmem>>, %arg3: memref<16x32xf32, #tpu.memory_space<vmem>>, %arg4: memref<128x32xbf16, #tpu.memory_space<vmem>>, %arg5: memref<1x32xf32, #tpu.memory_space<vmem>>, %arg6: memref<32x96xbf16, #tpu.memory_space<vmem>>, %arg7: memref<1x96xf32, #tpu.memory_space<vmem>>, %arg8: memref<32x96xbf16, #tpu.memory_space<vmem>>, %arg9: memref<1x32xf32, #tpu.memory_space<vmem>>, %arg10: memref<32x4xf32, #tpu.memory_space<vmem>>, %arg11: memref<1x4xf32, #tpu.memory_space<vmem>>, %arg12: memref<16x4xf32, #tpu.memory_space<vmem>>, %arg13: memref<128x96xf32, #tpu.memory_space<vmem>>) attributes {dimension_semantics = [#tpu.dimension_semantics<parallel>], iteration_bounds = array<i64: 1>, scalar_prefetch = 0 : i64, scratch_operands = 1 : i64, tpu.core_type = #tpu.core_type<tc>, window_params = [{transform_indices = @transform_0, window_bounds = array<i64: 8, 16, 128>}, {transform_indices = @transform_1, window_bounds = array<i64: 8, 16, 1>}, {transform_indices = @transform_2, window_bounds = array<i64: 16, 32>}, {pipeline_mode = #tpu.pipeline_mode<synchronous>, transform_indices = @transform_3, window_bounds = array<i64: 128, 32>}, {pipeline_mode = #tpu.pipeline_mode<synchronous>, transform_indices = @transform_4, window_bounds = array<i64: 1, 32>}, {pipeline_mode = #tpu.pipeline_mode<synchronous>, transform_indices = @transform_5, window_bounds = array<i64: 32, 96>}, {pipeline_mode = #tpu.pipeline_mode<synchronous>, transform_indices = @transform_6, window_bounds = array<i64: 1, 96>}, {pipeline_mode = #tpu.pipeline_mode<synchronous>, transform_indices = @transform_7, window_bounds = array<i64: 32, 96>}, {pipeline_mode = #tpu.pipeline_mode<synchronous>, transform_indices = @transform_8, window_bounds = array<i64: 1, 32>}, {pipeline_mode = #tpu.pipeline_mode<synchronous>, transform_indices = @transform_9, window_bounds = array<i64: 32, 4>}, {pipeline_mode = #tpu.pipeline_mode<synchronous>, transform_indices = @transform_10, window_bounds = array<i64: 1, 4>}, {transform_indices = @transform_11, window_bounds = array<i64: 16, 4>}]} {
    %c0 = arith.constant 0 : index
    %c0_0 = arith.constant 0 : index
    %c0_1 = arith.constant 0 : index
    %0 = vector.load %arg1[%c0, %c0_0, %c0_1] : memref<8x16x128xf32, #tpu.memory_space<vmem>>, vector<8x16x128xf32>
    %1 = vector.shape_cast %0 : vector<8x16x128xf32> to vector<128x128xf32>
    %2 = arith.truncf %1 : vector<128x128xf32> to vector<128x128xbf16>
    %c0_2 = arith.constant 0 : index
    %c0_3 = arith.constant 0 : index
    %3 = vector.load %arg4[%c0_2, %c0_3] : memref<128x32xbf16, #tpu.memory_space<vmem>>, vector<128x32xbf16>
    %cst = arith.constant dense<0.000000e+00> : vector<128x32xf32>
    %4 = tpu.matmul %2, %3, %cst {dimension_numbers = #tpu.dot_dimension_numbers<[1], [0], [0], [1], [0, 0, 1, 1], [], []>} : vector<128x128xbf16>, vector<128x32xbf16>, vector<128x32xf32> -> vector<128x32xf32>
    %c0_4 = arith.constant 0 : index
    %c0_5 = arith.constant 0 : index
    %5 = vector.load %arg5[%c0_4, %c0_5] : memref<1x32xf32, #tpu.memory_space<vmem>>, vector<1x32xf32>
    %6 = vector.broadcast %5 : vector<1x32xf32> to vector<128x32xf32>
    %7 = arith.addf %4, %6 : vector<128x32xf32>
    %cst_6 = arith.constant 0.000000e+00 : f32
    %8 = vector.broadcast %cst_6 : f32 to vector<128x32xf32>
    %9 = arith.maximumf %7, %8 : vector<128x32xf32>
    %10 = arith.truncf %9 : vector<128x32xf32> to vector<128x32xbf16>
    %c0_7 = arith.constant 0 : index
    %c0_8 = arith.constant 0 : index
    %11 = vector.load %arg6[%c0_7, %c0_8] : memref<32x96xbf16, #tpu.memory_space<vmem>>, vector<32x96xbf16>
    %cst_9 = arith.constant dense<0.000000e+00> : vector<128x96xf32>
    %12 = tpu.matmul %10, %11, %cst_9 {dimension_numbers = #tpu.dot_dimension_numbers<[1], [0], [0], [1], [0, 0, 1, 1], [], []>} : vector<128x32xbf16>, vector<32x96xbf16>, vector<128x96xf32> -> vector<128x96xf32>
    %c0_10 = arith.constant 0 : index
    %c0_11 = arith.constant 0 : index
    %13 = vector.load %arg7[%c0_10, %c0_11] : memref<1x96xf32, #tpu.memory_space<vmem>>, vector<1x96xf32>
    %14 = vector.broadcast %13 : vector<1x96xf32> to vector<128x96xf32>
    %15 = arith.addf %12, %14 : vector<128x96xf32>
    %c0_12 = arith.constant 0 : index
    %c0_13 = arith.constant 0 : index
    %16 = vector.load %arg13[%c0_12, %c0_13] : memref<128x96xf32, #tpu.memory_space<vmem>>, vector<128x96xf32>
    tpu.vector_store %arg13[%c0_12, %c0_13], %15 {strides = array<i32>} : memref<128x96xf32, #tpu.memory_space<vmem>>, vector<128x96xf32>,
    %c0_14 = arith.constant 0 : index
    %c0_15 = arith.constant 0 : index
    %17 = vector.load %arg8[%c0_14, %c0_15] : memref<32x96xbf16, #tpu.memory_space<vmem>>, vector<32x96xbf16>
    %c0_16 = arith.constant 0 : index
    %c0_17 = arith.constant 0 : index
    %18 = vector.load %arg9[%c0_16, %c0_17] : memref<1x32xf32, #tpu.memory_space<vmem>>, vector<1x32xf32>
    %c0_18 = arith.constant 0 : index
    %c0_19 = arith.constant 0 : index
    %19 = vector.load %arg3[%c0_18, %c0_19] : memref<16x32xf32, #tpu.memory_space<vmem>>, vector<16x32xf32>
    %cst_20 = arith.constant 0.000000e+00 : f32
    %20 = vector.broadcast %cst_20 : f32 to vector<16x32xf32>
    %c0_i32 = arith.constant 0 : i32
    %21 = arith.truncf %19 : vector<16x32xf32> to vector<16x32xbf16>
    %cst_21 = arith.constant dense<0.000000e+00> : vector<16x96xf32>
    %22 = tpu.matmul %21, %17, %cst_21 {dimension_numbers = #tpu.dot_dimension_numbers<[1], [0], [0], [1], [0, 0, 1, 1], [], []>} : vector<16x32xbf16>, vector<32x96xbf16>, vector<16x96xf32> -> vector<16x96xf32>
    %c16_i32 = arith.constant 16 : i32
    %23 = arith.muli %c0_i32, %c16_i32 : i32
    %24 = tpu.assume_multiple %23, 16 : i32
    %25 = arith.index_cast %24 : i32 to index
    %c0_22 = arith.constant 0 : index
    %26 = vector.load %arg13[%25, %c0_22] : memref<128x96xf32, #tpu.memory_space<vmem>>, vector<16x96xf32>
    %27 = vector.extract_strided_slice %26 {offsets = [0, 0], sizes = [16, 64], strides = [1, 1]} : vector<16x96xf32> to vector<16x64xf32>
    %28 = vector.extract_strided_slice %22 {offsets = [0, 0], sizes = [16, 64], strides = [1, 1]} : vector<16x96xf32> to vector<16x64xf32>
    %29 = arith.addf %27, %28 : vector<16x64xf32>
    %cst_23 = arith.constant 5.000000e-01 : f32
    %30 = vector.broadcast %cst_23 : f32 to vector<16x64xf32>
    %31 = arith.mulf %30, %29 : vector<16x64xf32>
    %32 = math.tanh %31 : vector<16x64xf32>
    %cst_24 = arith.constant 1.000000e+00 : f32
    %33 = vector.broadcast %cst_24 : f32 to vector<16x64xf32>
    %34 = arith.addf %32, %33 : vector<16x64xf32>
    %cst_25 = arith.constant 5.000000e-01 : f32
    %35 = vector.broadcast %cst_25 : f32 to vector<16x64xf32>
    %36 = arith.mulf %35, %34 : vector<16x64xf32>
    %37 = vector.extract_strided_slice %36 {offsets = [0, 0], sizes = [16, 32], strides = [1, 1]} : vector<16x64xf32> to vector<16x32xf32>
    %38 = vector.extract_strided_slice %36 {offsets = [0, 32], sizes = [16, 32], strides = [1, 1]} : vector<16x64xf32> to vector<16x32xf32>
    %39 = vector.extract_strided_slice %26 {offsets = [0, 64], sizes = [16, 32], strides = [1, 1]} : vector<16x96xf32> to vector<16x32xf32>
    %40 = vector.extract_strided_slice %22 {offsets = [0, 64], sizes = [16, 32], strides = [1, 1]} : vector<16x96xf32> to vector<16x32xf32>
    %41 = vector.broadcast %18 : vector<1x32xf32> to vector<16x32xf32>
    %42 = arith.addf %40, %41 : vector<16x32xf32>
    %43 = arith.mulf %37, %42 : vector<16x32xf32>
    %44 = arith.addf %39, %43 : vector<16x32xf32>
    %45 = math.tanh %44 : vector<16x32xf32>
    %cst_26 = arith.constant 1.000000e+00 : f32
    %46 = vector.broadcast %cst_26 : f32 to vector<16x32xf32>
    %47 = arith.subf %46, %38 : vector<16x32xf32>
    %48 = arith.mulf %47, %45 : vector<16x32xf32>
    %49 = arith.mulf %38, %19 : vector<16x32xf32>
    %50 = arith.addf %48, %49 : vector<16x32xf32>
    %51 = arith.index_cast %c0_i32 : i32 to index
    %c0_27 = arith.constant 0 : index
    %c0_28 = arith.constant 0 : index
    %52 = vector.load %arg2[%51, %c0_27, %c0_28] : memref<8x16x1xf32, #tpu.memory_space<vmem>>, vector<1x16x1xf32>
    %53 = vector.shape_cast %52 : vector<1x16x1xf32> to vector<16x1xf32>
    %54 = vector.broadcast %53 : vector<16x1xf32> to vector<16x32xf32>
    %55 = arith.mulf %50, %54 : vector<16x32xf32>
    %56 = arith.addf %20, %55 : vector<16x32xf32>
    %c1_i32 = arith.constant 1 : i32
    %57 = arith.truncf %50 : vector<16x32xf32> to vector<16x32xbf16>
    %cst_29 = arith.constant dense<0.000000e+00> : vector<16x96xf32>
    %58 = tpu.matmul %57, %17, %cst_29 {dimension_numbers = #tpu.dot_dimension_numbers<[1], [0], [0], [1], [0, 0, 1, 1], [], []>} : vector<16x32xbf16>, vector<32x96xbf16>, vector<16x96xf32> -> vector<16x96xf32>
    %c16_i32_30 = arith.constant 16 : i32
    %59 = arith.muli %c1_i32, %c16_i32_30 : i32
    %60 = tpu.assume_multiple %59, 16 : i32
    %61 = arith.index_cast %60 : i32 to index
    %c0_31 = arith.constant 0 : index
    %62 = vector.load %arg13[%61, %c0_31] : memref<128x96xf32, #tpu.memory_space<vmem>>, vector<16x96xf32>
    %63 = vector.extract_strided_slice %62 {offsets = [0, 0], sizes = [16, 64], strides = [1, 1]} : vector<16x96xf32> to vector<16x64xf32>
    %64 = vector.extract_strided_slice %58 {offsets = [0, 0], sizes = [16, 64], strides = [1, 1]} : vector<16x96xf32> to vector<16x64xf32>
    %65 = arith.addf %63, %64 : vector<16x64xf32>
    %cst_32 = arith.constant 5.000000e-01 : f32
    %66 = vector.broadcast %cst_32 : f32 to vector<16x64xf32>
    %67 = arith.mulf %66, %65 : vector<16x64xf32>
    %68 = math.tanh %67 : vector<16x64xf32>
    %cst_33 = arith.constant 1.000000e+00 : f32
    %69 = vector.broadcast %cst_33 : f32 to vector<16x64xf32>
    %70 = arith.addf %68, %69 : vector<16x64xf32>
    %cst_34 = arith.constant 5.000000e-01 : f32
    %71 = vector.broadcast %cst_34 : f32 to vector<16x64xf32>
    %72 = arith.mulf %71, %70 : vector<16x64xf32>
    %73 = vector.extract_strided_slice %72 {offsets = [0, 0], sizes = [16, 32], strides = [1, 1]} : vector<16x64xf32> to vector<16x32xf32>
    %74 = vector.extract_strided_slice %72 {offsets = [0, 32], sizes = [16, 32], strides = [1, 1]} : vector<16x64xf32> to vector<16x32xf32>
    %75 = vector.extract_strided_slice %62 {offsets = [0, 64], sizes = [16, 32], strides = [1, 1]} : vector<16x96xf32> to vector<16x32xf32>
    %76 = vector.extract_strided_slice %58 {offsets = [0, 64], sizes = [16, 32], strides = [1, 1]} : vector<16x96xf32> to vector<16x32xf32>
    %77 = vector.broadcast %18 : vector<1x32xf32> to vector<16x32xf32>
    %78 = arith.addf %76, %77 : vector<16x32xf32>
    %79 = arith.mulf %73, %78 : vector<16x32xf32>
    %80 = arith.addf %75, %79 : vector<16x32xf32>
    %81 = math.tanh %80 : vector<16x32xf32>
    %cst_35 = arith.constant 1.000000e+00 : f32
    %82 = vector.broadcast %cst_35 : f32 to vector<16x32xf32>
    %83 = arith.subf %82, %74 : vector<16x32xf32>
    %84 = arith.mulf %83, %81 : vector<16x32xf32>
    %85 = arith.mulf %74, %50 : vector<16x32xf32>
    %86 = arith.addf %84, %85 : vector<16x32xf32>
    %87 = arith.index_cast %c1_i32 : i32 to index
    %c0_36 = arith.constant 0 : index
    %c0_37 = arith.constant 0 : index
    %88 = vector.load %arg2[%87, %c0_36, %c0_37] : memref<8x16x1xf32, #tpu.memory_space<vmem>>, vector<1x16x1xf32>
    %89 = vector.shape_cast %88 : vector<1x16x1xf32> to vector<16x1xf32>
    %90 = vector.broadcast %89 : vector<16x1xf32> to vector<16x32xf32>
    %91 = arith.mulf %86, %90 : vector<16x32xf32>
    %92 = arith.addf %56, %91 : vector<16x32xf32>
    %c2_i32 = arith.constant 2 : i32
    %93 = arith.truncf %86 : vector<16x32xf32> to vector<16x32xbf16>
    %cst_38 = arith.constant dense<0.000000e+00> : vector<16x96xf32>
    %94 = tpu.matmul %93, %17, %cst_38 {dimension_numbers = #tpu.dot_dimension_numbers<[1], [0], [0], [1], [0, 0, 1, 1], [], []>} : vector<16x32xbf16>, vector<32x96xbf16>, vector<16x96xf32> -> vector<16x96xf32>
    %c16_i32_39 = arith.constant 16 : i32
    %95 = arith.muli %c2_i32, %c16_i32_39 : i32
    %96 = tpu.assume_multiple %95, 16 : i32
    %97 = arith.index_cast %96 : i32 to index
    %c0_40 = arith.constant 0 : index
    %98 = vector.load %arg13[%97, %c0_40] : memref<128x96xf32, #tpu.memory_space<vmem>>, vector<16x96xf32>
    %99 = vector.extract_strided_slice %98 {offsets = [0, 0], sizes = [16, 64], strides = [1, 1]} : vector<16x96xf32> to vector<16x64xf32>
    %100 = vector.extract_strided_slice %94 {offsets = [0, 0], sizes = [16, 64], strides = [1, 1]} : vector<16x96xf32> to vector<16x64xf32>
    %101 = arith.addf %99, %100 : vector<16x64xf32>
    %cst_41 = arith.constant 5.000000e-01 : f32
    %102 = vector.broadcast %cst_41 : f32 to vector<16x64xf32>
    %103 = arith.mulf %102, %101 : vector<16x64xf32>
    %104 = math.tanh %103 : vector<16x64xf32>
    %cst_42 = arith.constant 1.000000e+00 : f32
    %105 = vector.broadcast %cst_42 : f32 to vector<16x64xf32>
    %106 = arith.addf %104, %105 : vector<16x64xf32>
    %cst_43 = arith.constant 5.000000e-01 : f32
    %107 = vector.broadcast %cst_43 : f32 to vector<16x64xf32>
    %108 = arith.mulf %107, %106 : vector<16x64xf32>
    %109 = vector.extract_strided_slice %108 {offsets = [0, 0], sizes = [16, 32], strides = [1, 1]} : vector<16x64xf32> to vector<16x32xf32>
    %110 = vector.extract_strided_slice %108 {offsets = [0, 32], sizes = [16, 32], strides = [1, 1]} : vector<16x64xf32> to vector<16x32xf32>
    %111 = vector.extract_strided_slice %98 {offsets = [0, 64], sizes = [16, 32], strides = [1, 1]} : vector<16x96xf32> to vector<16x32xf32>
    %112 = vector.extract_strided_slice %94 {offsets = [0, 64], sizes = [16, 32], strides = [1, 1]} : vector<16x96xf32> to vector<16x32xf32>
    %113 = vector.broadcast %18 : vector<1x32xf32> to vector<16x32xf32>
    %114 = arith.addf %112, %113 : vector<16x32xf32>
    %115 = arith.mulf %109, %114 : vector<16x32xf32>
    %116 = arith.addf %111, %115 : vector<16x32xf32>
    %117 = math.tanh %116 : vector<16x32xf32>
    %cst_44 = arith.constant 1.000000e+00 : f32
    %118 = vector.broadcast %cst_44 : f32 to vector<16x32xf32>
    %119 = arith.subf %118, %110 : vector<16x32xf32>
    %120 = arith.mulf %119, %117 : vector<16x32xf32>
    %121 = arith.mulf %110, %86 : vector<16x32xf32>
    %122 = arith.addf %120, %121 : vector<16x32xf32>
    %123 = arith.index_cast %c2_i32 : i32 to index
    %c0_45 = arith.constant 0 : index
    %c0_46 = arith.constant 0 : index
    %124 = vector.load %arg2[%123, %c0_45, %c0_46] : memref<8x16x1xf32, #tpu.memory_space<vmem>>, vector<1x16x1xf32>
    %125 = vector.shape_cast %124 : vector<1x16x1xf32> to vector<16x1xf32>
    %126 = vector.broadcast %125 : vector<16x1xf32> to vector<16x32xf32>
    %127 = arith.mulf %122, %126 : vector<16x32xf32>
    %128 = arith.addf %92, %127 : vector<16x32xf32>
    %c3_i32 = arith.constant 3 : i32
    %129 = arith.truncf %122 : vector<16x32xf32> to vector<16x32xbf16>
    %cst_47 = arith.constant dense<0.000000e+00> : vector<16x96xf32>
    %130 = tpu.matmul %129, %17, %cst_47 {dimension_numbers = #tpu.dot_dimension_numbers<[1], [0], [0], [1], [0, 0, 1, 1], [], []>} : vector<16x32xbf16>, vector<32x96xbf16>, vector<16x96xf32> -> vector<16x96xf32>
    %c16_i32_48 = arith.constant 16 : i32
    %131 = arith.muli %c3_i32, %c16_i32_48 : i32
    %132 = tpu.assume_multiple %131, 16 : i32
    %133 = arith.index_cast %132 : i32 to index
    %c0_49 = arith.constant 0 : index
    %134 = vector.load %arg13[%133, %c0_49] : memref<128x96xf32, #tpu.memory_space<vmem>>, vector<16x96xf32>
    %135 = vector.extract_strided_slice %134 {offsets = [0, 0], sizes = [16, 64], strides = [1, 1]} : vector<16x96xf32> to vector<16x64xf32>
    %136 = vector.extract_strided_slice %130 {offsets = [0, 0], sizes = [16, 64], strides = [1, 1]} : vector<16x96xf32> to vector<16x64xf32>
    %137 = arith.addf %135, %136 : vector<16x64xf32>
    %cst_50 = arith.constant 5.000000e-01 : f32
    %138 = vector.broadcast %cst_50 : f32 to vector<16x64xf32>
    %139 = arith.mulf %138, %137 : vector<16x64xf32>
    %140 = math.tanh %139 : vector<16x64xf32>
    %cst_51 = arith.constant 1.000000e+00 : f32
    %141 = vector.broadcast %cst_51 : f32 to vector<16x64xf32>
    %142 = arith.addf %140, %141 : vector<16x64xf32>
    %cst_52 = arith.constant 5.000000e-01 : f32
    %143 = vector.broadcast %cst_52 : f32 to vector<16x64xf32>
    %144 = arith.mulf %143, %142 : vector<16x64xf32>
    %145 = vector.extract_strided_slice %144 {offsets = [0, 0], sizes = [16, 32], strides = [1, 1]} : vector<16x64xf32> to vector<16x32xf32>
    %146 = vector.extract_strided_slice %144 {offsets = [0, 32], sizes = [16, 32], strides = [1, 1]} : vector<16x64xf32> to vector<16x32xf32>
    %147 = vector.extract_strided_slice %134 {offsets = [0, 64], sizes = [16, 32], strides = [1, 1]} : vector<16x96xf32> to vector<16x32xf32>
    %148 = vector.extract_strided_slice %130 {offsets = [0, 64], sizes = [16, 32], strides = [1, 1]} : vector<16x96xf32> to vector<16x32xf32>
    %149 = vector.broadcast %18 : vector<1x32xf32> to vector<16x32xf32>
    %150 = arith.addf %148, %149 : vector<16x32xf32>
    %151 = arith.mulf %145, %150 : vector<16x32xf32>
    %152 = arith.addf %147, %151 : vector<16x32xf32>
    %153 = math.tanh %152 : vector<16x32xf32>
    %cst_53 = arith.constant 1.000000e+00 : f32
    %154 = vector.broadcast %cst_53 : f32 to vector<16x32xf32>
    %155 = arith.subf %154, %146 : vector<16x32xf32>
    %156 = arith.mulf %155, %153 : vector<16x32xf32>
    %157 = arith.mulf %146, %122 : vector<16x32xf32>
    %158 = arith.addf %156, %157 : vector<16x32xf32>
    %159 = arith.index_cast %c3_i32 : i32 to index
    %c0_54 = arith.constant 0 : index
    %c0_55 = arith.constant 0 : index
    %160 = vector.load %arg2[%159, %c0_54, %c0_55] : memref<8x16x1xf32, #tpu.memory_space<vmem>>, vector<1x16x1xf32>
    %161 = vector.shape_cast %160 : vector<1x16x1xf32> to vector<16x1xf32>
    %162 = vector.broadcast %161 : vector<16x1xf32> to vector<16x32xf32>
    %163 = arith.mulf %158, %162 : vector<16x32xf32>
    %164 = arith.addf %128, %163 : vector<16x32xf32>
    %c4_i32 = arith.constant 4 : i32
    %165 = arith.truncf %158 : vector<16x32xf32> to vector<16x32xbf16>
    %cst_56 = arith.constant dense<0.000000e+00> : vector<16x96xf32>
    %166 = tpu.matmul %165, %17, %cst_56 {dimension_numbers = #tpu.dot_dimension_numbers<[1], [0], [0], [1], [0, 0, 1, 1], [], []>} : vector<16x32xbf16>, vector<32x96xbf16>, vector<16x96xf32> -> vector<16x96xf32>
    %c16_i32_57 = arith.constant 16 : i32
    %167 = arith.muli %c4_i32, %c16_i32_57 : i32
    %168 = tpu.assume_multiple %167, 16 : i32
    %169 = arith.index_cast %168 : i32 to index
    %c0_58 = arith.constant 0 : index
    %170 = vector.load %arg13[%169, %c0_58] : memref<128x96xf32, #tpu.memory_space<vmem>>, vector<16x96xf32>
    %171 = vector.extract_strided_slice %170 {offsets = [0, 0], sizes = [16, 64], strides = [1, 1]} : vector<16x96xf32> to vector<16x64xf32>
    %172 = vector.extract_strided_slice %166 {offsets = [0, 0], sizes = [16, 64], strides = [1, 1]} : vector<16x96xf32> to vector<16x64xf32>
    %173 = arith.addf %171, %172 : vector<16x64xf32>
    %cst_59 = arith.constant 5.000000e-01 : f32
    %174 = vector.broadcast %cst_59 : f32 to vector<16x64xf32>
    %175 = arith.mulf %174, %173 : vector<16x64xf32>
    %176 = math.tanh %175 : vector<16x64xf32>
    %cst_60 = arith.constant 1.000000e+00 : f32
    %177 = vector.broadcast %cst_60 : f32 to vector<16x64xf32>
    %178 = arith.addf %176, %177 : vector<16x64xf32>
    %cst_61 = arith.constant 5.000000e-01 : f32
    %179 = vector.broadcast %cst_61 : f32 to vector<16x64xf32>
    %180 = arith.mulf %179, %178 : vector<16x64xf32>
    %181 = vector.extract_strided_slice %180 {offsets = [0, 0], sizes = [16, 32], strides = [1, 1]} : vector<16x64xf32> to vector<16x32xf32>
    %182 = vector.extract_strided_slice %180 {offsets = [0, 32], sizes = [16, 32], strides = [1, 1]} : vector<16x64xf32> to vector<16x32xf32>
    %183 = vector.extract_strided_slice %170 {offsets = [0, 64], sizes = [16, 32], strides = [1, 1]} : vector<16x96xf32> to vector<16x32xf32>
    %184 = vector.extract_strided_slice %166 {offsets = [0, 64], sizes = [16, 32], strides = [1, 1]} : vector<16x96xf32> to vector<16x32xf32>
    %185 = vector.broadcast %18 : vector<1x32xf32> to vector<16x32xf32>
    %186 = arith.addf %184, %185 : vector<16x32xf32>
    %187 = arith.mulf %181, %186 : vector<16x32xf32>
    %188 = arith.addf %183, %187 : vector<16x32xf32>
    %189 = math.tanh %188 : vector<16x32xf32>
    %cst_62 = arith.constant 1.000000e+00 : f32
    %190 = vector.broadcast %cst_62 : f32 to vector<16x32xf32>
    %191 = arith.subf %190, %182 : vector<16x32xf32>
    %192 = arith.mulf %191, %189 : vector<16x32xf32>
    %193 = arith.mulf %182, %158 : vector<16x32xf32>
    %194 = arith.addf %192, %193 : vector<16x32xf32>
    %195 = arith.index_cast %c4_i32 : i32 to index
    %c0_63 = arith.constant 0 : index
    %c0_64 = arith.constant 0 : index
    %196 = vector.load %arg2[%195, %c0_63, %c0_64] : memref<8x16x1xf32, #tpu.memory_space<vmem>>, vector<1x16x1xf32>
    %197 = vector.shape_cast %196 : vector<1x16x1xf32> to vector<16x1xf32>
    %198 = vector.broadcast %197 : vector<16x1xf32> to vector<16x32xf32>
    %199 = arith.mulf %194, %198 : vector<16x32xf32>
    %200 = arith.addf %164, %199 : vector<16x32xf32>
    %c5_i32 = arith.constant 5 : i32
    %201 = arith.truncf %194 : vector<16x32xf32> to vector<16x32xbf16>
    %cst_65 = arith.constant dense<0.000000e+00> : vector<16x96xf32>
    %202 = tpu.matmul %201, %17, %cst_65 {dimension_numbers = #tpu.dot_dimension_numbers<[1], [0], [0], [1], [0, 0, 1, 1], [], []>} : vector<16x32xbf16>, vector<32x96xbf16>, vector<16x96xf32> -> vector<16x96xf32>
    %c16_i32_66 = arith.constant 16 : i32
    %203 = arith.muli %c5_i32, %c16_i32_66 : i32
    %204 = tpu.assume_multiple %203, 16 : i32
    %205 = arith.index_cast %204 : i32 to index
    %c0_67 = arith.constant 0 : index
    %206 = vector.load %arg13[%205, %c0_67] : memref<128x96xf32, #tpu.memory_space<vmem>>, vector<16x96xf32>
    %207 = vector.extract_strided_slice %206 {offsets = [0, 0], sizes = [16, 64], strides = [1, 1]} : vector<16x96xf32> to vector<16x64xf32>
    %208 = vector.extract_strided_slice %202 {offsets = [0, 0], sizes = [16, 64], strides = [1, 1]} : vector<16x96xf32> to vector<16x64xf32>
    %209 = arith.addf %207, %208 : vector<16x64xf32>
    %cst_68 = arith.constant 5.000000e-01 : f32
    %210 = vector.broadcast %cst_68 : f32 to vector<16x64xf32>
    %211 = arith.mulf %210, %209 : vector<16x64xf32>
    %212 = math.tanh %211 : vector<16x64xf32>
    %cst_69 = arith.constant 1.000000e+00 : f32
    %213 = vector.broadcast %cst_69 : f32 to vector<16x64xf32>
    %214 = arith.addf %212, %213 : vector<16x64xf32>
    %cst_70 = arith.constant 5.000000e-01 : f32
    %215 = vector.broadcast %cst_70 : f32 to vector<16x64xf32>
    %216 = arith.mulf %215, %214 : vector<16x64xf32>
    %217 = vector.extract_strided_slice %216 {offsets = [0, 0], sizes = [16, 32], strides = [1, 1]} : vector<16x64xf32> to vector<16x32xf32>
    %218 = vector.extract_strided_slice %216 {offsets = [0, 32], sizes = [16, 32], strides = [1, 1]} : vector<16x64xf32> to vector<16x32xf32>
    %219 = vector.extract_strided_slice %206 {offsets = [0, 64], sizes = [16, 32], strides = [1, 1]} : vector<16x96xf32> to vector<16x32xf32>
    %220 = vector.extract_strided_slice %202 {offsets = [0, 64], sizes = [16, 32], strides = [1, 1]} : vector<16x96xf32> to vector<16x32xf32>
    %221 = vector.broadcast %18 : vector<1x32xf32> to vector<16x32xf32>
    %222 = arith.addf %220, %221 : vector<16x32xf32>
    %223 = arith.mulf %217, %222 : vector<16x32xf32>
    %224 = arith.addf %219, %223 : vector<16x32xf32>
    %225 = math.tanh %224 : vector<16x32xf32>
    %cst_71 = arith.constant 1.000000e+00 : f32
    %226 = vector.broadcast %cst_71 : f32 to vector<16x32xf32>
    %227 = arith.subf %226, %218 : vector<16x32xf32>
    %228 = arith.mulf %227, %225 : vector<16x32xf32>
    %229 = arith.mulf %218, %194 : vector<16x32xf32>
    %230 = arith.addf %228, %229 : vector<16x32xf32>
    %231 = arith.index_cast %c5_i32 : i32 to index
    %c0_72 = arith.constant 0 : index
    %c0_73 = arith.constant 0 : index
    %232 = vector.load %arg2[%231, %c0_72, %c0_73] : memref<8x16x1xf32, #tpu.memory_space<vmem>>, vector<1x16x1xf32>
    %233 = vector.shape_cast %232 : vector<1x16x1xf32> to vector<16x1xf32>
    %234 = vector.broadcast %233 : vector<16x1xf32> to vector<16x32xf32>
    %235 = arith.mulf %230, %234 : vector<16x32xf32>
    %236 = arith.addf %200, %235 : vector<16x32xf32>
    %c6_i32 = arith.constant 6 : i32
    %237 = arith.truncf %230 : vector<16x32xf32> to vector<16x32xbf16>
    %cst_74 = arith.constant dense<0.000000e+00> : vector<16x96xf32>
    %238 = tpu.matmul %237, %17, %cst_74 {dimension_numbers = #tpu.dot_dimension_numbers<[1], [0], [0], [1], [0, 0, 1, 1], [], []>} : vector<16x32xbf16>, vector<32x96xbf16>, vector<16x96xf32> -> vector<16x96xf32>
    %c16_i32_75 = arith.constant 16 : i32
    %239 = arith.muli %c6_i32, %c16_i32_75 : i32
    %240 = tpu.assume_multiple %239, 16 : i32
    %241 = arith.index_cast %240 : i32 to index
    %c0_76 = arith.constant 0 : index
    %242 = vector.load %arg13[%241, %c0_76] : memref<128x96xf32, #tpu.memory_space<vmem>>, vector<16x96xf32>
    %243 = vector.extract_strided_slice %242 {offsets = [0, 0], sizes = [16, 64], strides = [1, 1]} : vector<16x96xf32> to vector<16x64xf32>
    %244 = vector.extract_strided_slice %238 {offsets = [0, 0], sizes = [16, 64], strides = [1, 1]} : vector<16x96xf32> to vector<16x64xf32>
    %245 = arith.addf %243, %244 : vector<16x64xf32>
    %cst_77 = arith.constant 5.000000e-01 : f32
    %246 = vector.broadcast %cst_77 : f32 to vector<16x64xf32>
    %247 = arith.mulf %246, %245 : vector<16x64xf32>
    %248 = math.tanh %247 : vector<16x64xf32>
    %cst_78 = arith.constant 1.000000e+00 : f32
    %249 = vector.broadcast %cst_78 : f32 to vector<16x64xf32>
    %250 = arith.addf %248, %249 : vector<16x64xf32>
    %cst_79 = arith.constant 5.000000e-01 : f32
    %251 = vector.broadcast %cst_79 : f32 to vector<16x64xf32>
    %252 = arith.mulf %251, %250 : vector<16x64xf32>
    %253 = vector.extract_strided_slice %252 {offsets = [0, 0], sizes = [16, 32], strides = [1, 1]} : vector<16x64xf32> to vector<16x32xf32>
    %254 = vector.extract_strided_slice %252 {offsets = [0, 32], sizes = [16, 32], strides = [1, 1]} : vector<16x64xf32> to vector<16x32xf32>
    %255 = vector.extract_strided_slice %242 {offsets = [0, 64], sizes = [16, 32], strides = [1, 1]} : vector<16x96xf32> to vector<16x32xf32>
    %256 = vector.extract_strided_slice %238 {offsets = [0, 64], sizes = [16, 32], strides = [1, 1]} : vector<16x96xf32> to vector<16x32xf32>
    %257 = vector.broadcast %18 : vector<1x32xf32> to vector<16x32xf32>
    %258 = arith.addf %256, %257 : vector<16x32xf32>
    %259 = arith.mulf %253, %258 : vector<16x32xf32>
    %260 = arith.addf %255, %259 : vector<16x32xf32>
    %261 = math.tanh %260 : vector<16x32xf32>
    %cst_80 = arith.constant 1.000000e+00 : f32
    %262 = vector.broadcast %cst_80 : f32 to vector<16x32xf32>
    %263 = arith.subf %262, %254 : vector<16x32xf32>
    %264 = arith.mulf %263, %261 : vector<16x32xf32>
    %265 = arith.mulf %254, %230 : vector<16x32xf32>
    %266 = arith.addf %264, %265 : vector<16x32xf32>
    %267 = arith.index_cast %c6_i32 : i32 to index
    %c0_81 = arith.constant 0 : index
    %c0_82 = arith.constant 0 : index
    %268 = vector.load %arg2[%267, %c0_81, %c0_82] : memref<8x16x1xf32, #tpu.memory_space<vmem>>, vector<1x16x1xf32>
    %269 = vector.shape_cast %268 : vector<1x16x1xf32> to vector<16x1xf32>
    %270 = vector.broadcast %269 : vector<16x1xf32> to vector<16x32xf32>
    %271 = arith.mulf %266, %270 : vector<16x32xf32>
    %272 = arith.addf %236, %271 : vector<16x32xf32>
    %c7_i32 = arith.constant 7 : i32
    %273 = arith.truncf %266 : vector<16x32xf32> to vector<16x32xbf16>
    %cst_83 = arith.constant dense<0.000000e+00> : vector<16x96xf32>
    %274 = tpu.matmul %273, %17, %cst_83 {dimension_numbers = #tpu.dot_dimension_numbers<[1], [0], [0], [1], [0, 0, 1, 1], [], []>} : vector<16x32xbf16>, vector<32x96xbf16>, vector<16x96xf32> -> vector<16x96xf32>
    %c16_i32_84 = arith.constant 16 : i32
    %275 = arith.muli %c7_i32, %c16_i32_84 : i32
    %276 = tpu.assume_multiple %275, 16 : i32
    %277 = arith.index_cast %276 : i32 to index
    %c0_85 = arith.constant 0 : index
    %278 = vector.load %arg13[%277, %c0_85] : memref<128x96xf32, #tpu.memory_space<vmem>>, vector<16x96xf32>
    %279 = vector.extract_strided_slice %278 {offsets = [0, 0], sizes = [16, 64], strides = [1, 1]} : vector<16x96xf32> to vector<16x64xf32>
    %280 = vector.extract_strided_slice %274 {offsets = [0, 0], sizes = [16, 64], strides = [1, 1]} : vector<16x96xf32> to vector<16x64xf32>
    %281 = arith.addf %279, %280 : vector<16x64xf32>
    %cst_86 = arith.constant 5.000000e-01 : f32
    %282 = vector.broadcast %cst_86 : f32 to vector<16x64xf32>
    %283 = arith.mulf %282, %281 : vector<16x64xf32>
    %284 = math.tanh %283 : vector<16x64xf32>
    %cst_87 = arith.constant 1.000000e+00 : f32
    %285 = vector.broadcast %cst_87 : f32 to vector<16x64xf32>
    %286 = arith.addf %284, %285 : vector<16x64xf32>
    %cst_88 = arith.constant 5.000000e-01 : f32
    %287 = vector.broadcast %cst_88 : f32 to vector<16x64xf32>
    %288 = arith.mulf %287, %286 : vector<16x64xf32>
    %289 = vector.extract_strided_slice %288 {offsets = [0, 0], sizes = [16, 32], strides = [1, 1]} : vector<16x64xf32> to vector<16x32xf32>
    %290 = vector.extract_strided_slice %288 {offsets = [0, 32], sizes = [16, 32], strides = [1, 1]} : vector<16x64xf32> to vector<16x32xf32>
    %291 = vector.extract_strided_slice %278 {offsets = [0, 64], sizes = [16, 32], strides = [1, 1]} : vector<16x96xf32> to vector<16x32xf32>
    %292 = vector.extract_strided_slice %274 {offsets = [0, 64], sizes = [16, 32], strides = [1, 1]} : vector<16x96xf32> to vector<16x32xf32>
    %293 = vector.broadcast %18 : vector<1x32xf32> to vector<16x32xf32>
    %294 = arith.addf %292, %293 : vector<16x32xf32>
    %295 = arith.mulf %289, %294 : vector<16x32xf32>
    %296 = arith.addf %291, %295 : vector<16x32xf32>
    %297 = math.tanh %296 : vector<16x32xf32>
    %cst_89 = arith.constant 1.000000e+00 : f32
    %298 = vector.broadcast %cst_89 : f32 to vector<16x32xf32>
    %299 = arith.subf %298, %290 : vector<16x32xf32>
    %300 = arith.mulf %299, %297 : vector<16x32xf32>
    %301 = arith.mulf %290, %266 : vector<16x32xf32>
    %302 = arith.addf %300, %301 : vector<16x32xf32>
    %303 = arith.index_cast %c7_i32 : i32 to index
    %c0_90 = arith.constant 0 : index
    %c0_91 = arith.constant 0 : index
    %304 = vector.load %arg2[%303, %c0_90, %c0_91] : memref<8x16x1xf32, #tpu.memory_space<vmem>>, vector<1x16x1xf32>
    %305 = vector.shape_cast %304 : vector<1x16x1xf32> to vector<16x1xf32>
    %306 = vector.broadcast %305 : vector<16x1xf32> to vector<16x32xf32>
    %307 = arith.mulf %302, %306 : vector<16x32xf32>
    %308 = arith.addf %272, %307 : vector<16x32xf32>
    %c8_i32 = arith.constant 8 : i32
    %c0_92 = arith.constant 0 : index
    %c0_93 = arith.constant 0 : index
    %309 = vector.load %arg10[%c0_92, %c0_93] : memref<32x4xf32, #tpu.memory_space<vmem>>, vector<32x4xf32>
    %cst_94 = arith.constant dense<0.000000e+00> : vector<16x4xf32>
    %310 = tpu.matmul %308, %309, %cst_94 {dimension_numbers = #tpu.dot_dimension_numbers<[1], [0], [0], [1], [0, 0, 1, 1], [], []>} : vector<16x32xf32>, vector<32x4xf32>, vector<16x4xf32> -> vector<16x4xf32>
    %c0_95 = arith.constant 0 : index
    %c0_96 = arith.constant 0 : index
    %311 = vector.load %arg11[%c0_95, %c0_96] : memref<1x4xf32, #tpu.memory_space<vmem>>, vector<1x4xf32>
    %312 = vector.broadcast %311 : vector<1x4xf32> to vector<16x4xf32>
    %313 = arith.addf %310, %312 : vector<16x4xf32>
    %cst_97 = arith.constant dense<0xFF800000> : vector<16xf32>
    %314 = vector.multi_reduction <maximumf>, %313, %cst_97 [1] : vector<16x4xf32> to vector<16xf32>
    %315 = vector.shape_cast %314 : vector<16xf32> to vector<16x1xf32>
    %316 = vector.broadcast %315 : vector<16x1xf32> to vector<16x4xf32>
    %317 = arith.subf %313, %316 : vector<16x4xf32>
    %318 = math.exp %317 : vector<16x4xf32>
    %cst_98 = arith.constant dense<0.000000e+00> : vector<16xf32>
    %319 = vector.multi_reduction <add>, %318, %cst_98 [1] : vector<16x4xf32> to vector<16xf32>
    %320 = vector.shape_cast %319 : vector<16xf32> to vector<16x1xf32>
    %321 = tpu.reciprocal %320 : vector<16x1xf32> -> vector<16x1xf32>
    %322 = vector.broadcast %321 : vector<16x1xf32> to vector<16x4xf32>
    %323 = arith.mulf %318, %322 : vector<16x4xf32>
    %c0_99 = arith.constant 0 : index
    %c0_100 = arith.constant 0 : index
    %324 = vector.load %arg12[%c0_99, %c0_100] : memref<16x4xf32, #tpu.memory_space<vmem>>, vector<16x4xf32>
    tpu.vector_store %arg12[%c0_99, %c0_100], %323 {strides = array<i32>} : memref<16x4xf32, #tpu.memory_space<vmem>>, vector<16x4xf32>,
    return
  }
  func.func @transform_0(%arg0: i32) -> (i32, i32, i32) {
    %c0_i32 = arith.constant 0 : i32
    %c0_i32_0 = arith.constant 0 : i32
    %c0_i32_1 = arith.constant 0 : i32
    return %c0_i32, %arg0, %c0_i32_0 : i32, i32, i32
  }
  func.func @transform_1(%arg0: i32) -> (i32, i32, i32) {
    %c0_i32 = arith.constant 0 : i32
    %c0_i32_0 = arith.constant 0 : i32
    %c0_i32_1 = arith.constant 0 : i32
    return %c0_i32, %arg0, %c0_i32_0 : i32, i32, i32
  }
  func.func @transform_2(%arg0: i32) -> (i32, i32) {
    %c0_i32 = arith.constant 0 : i32
    %c0_i32_0 = arith.constant 0 : i32
    return %arg0, %c0_i32 : i32, i32
  }
  func.func @transform_3(%arg0: i32) -> (i32, i32) {
    %c0_i32 = arith.constant 0 : i32
    %c0_i32_0 = arith.constant 0 : i32
    %c0_i32_1 = arith.constant 0 : i32
    return %c0_i32, %c0_i32_0 : i32, i32
  }
  func.func @transform_4(%arg0: i32) -> (i32, i32) {
    %c0_i32 = arith.constant 0 : i32
    %c0_i32_0 = arith.constant 0 : i32
    %c0_i32_1 = arith.constant 0 : i32
    return %c0_i32, %c0_i32_0 : i32, i32
  }
  func.func @transform_5(%arg0: i32) -> (i32, i32) {
    %c0_i32 = arith.constant 0 : i32
    %c0_i32_0 = arith.constant 0 : i32
    %c0_i32_1 = arith.constant 0 : i32
    return %c0_i32, %c0_i32_0 : i32, i32
  }
  func.func @transform_6(%arg0: i32) -> (i32, i32) {
    %c0_i32 = arith.constant 0 : i32
    %c0_i32_0 = arith.constant 0 : i32
    %c0_i32_1 = arith.constant 0 : i32
    return %c0_i32, %c0_i32_0 : i32, i32
  }
  func.func @transform_7(%arg0: i32) -> (i32, i32) {
    %c0_i32 = arith.constant 0 : i32
    %c0_i32_0 = arith.constant 0 : i32
    %c0_i32_1 = arith.constant 0 : i32
    return %c0_i32, %c0_i32_0 : i32, i32
  }
  func.func @transform_8(%arg0: i32) -> (i32, i32) {
    %c0_i32 = arith.constant 0 : i32
    %c0_i32_0 = arith.constant 0 : i32
    %c0_i32_1 = arith.constant 0 : i32
    return %c0_i32, %c0_i32_0 : i32, i32
  }
  func.func @transform_9(%arg0: i32) -> (i32, i32) {
    %c0_i32 = arith.constant 0 : i32
    %c0_i32_0 = arith.constant 0 : i32
    %c0_i32_1 = arith.constant 0 : i32
    return %c0_i32, %c0_i32_0 : i32, i32
  }
  func.func @transform_10(%arg0: i32) -> (i32, i32) {
    %c0_i32 = arith.constant 0 : i32
    %c0_i32_0 = arith.constant 0 : i32
    %c0_i32_1 = arith.constant 0 : i32
    return %c0_i32, %c0_i32_0 : i32, i32
  }
  func.func @transform_11(%arg0: i32) -> (i32, i32) {
    %c0_i32 = arith.constant 0 : i32
    %c0_i32_0 = arith.constant 0 : i32
    return %arg0, %c0_i32 : i32, i32
  }
}

</mosaic_0001>

<bundles_post_ra>
// kernel: tpu_custom_call.1
= control target key start
LH: loop header
LB: loop body
LE: loop exit
PB: predicated region body
PF: predicated region fallthrough
CT: control target
= control target key end

     0   :  { %v1839_v34 = vmov 0.0   ;;  %vm1840_vm0 = vmmov 0   ;;  %s1841_s14 = smov 64   ;;  %vm278_vm1 = vcmask 261120   ;;  %vm400_vm2 = vcmask 785408   ;;  %s2329_s3 = inlined_call_operand.vmem [shape: bf16[128,32], index: 3, kind: input, shape index: {}]   ;;  %s2330_s0 = inlined_call_operand.vmem [shape: f32[8,16,128], index: 0, kind: input, shape index: {}]   ;;  %s2331_s5 = inlined_call_operand.vmem [shape: bf16[32,96], index: 5, kind: input, shape index: {}]   ;;  %s2332_s7 = inlined_call_operand.vmem [shape: bf16[32,96], index: 7, kind: input, shape index: {}]   ;;  %s2333_s8 = inlined_call_operand.vmem [shape: f32[1,32], index: 8, kind: input, shape index: {}]   ;;  %s2334_s4 = inlined_call_operand.vmem [shape: f32[1,32], index: 4, kind: input, shape index: {}]   ;;  %s2335_s2 = inlined_call_operand.vmem [shape: f32[16,32], index: 2, kind: input, shape index: {}]   ;;  %s2336_s6 = inlined_call_operand.vmem [shape: f32[1,96], index: 6, kind: input, shape index: {}]   ;;  %s2337_s1 = inlined_call_operand.vmem [shape: f32[8,16,1], index: 1, kind: input, shape index: {}]   ;;  %s2338_s9 = inlined_call_operand.vmem [shape: f32[32,4], index: 9, kind: input, shape index: {}]   ;;  %s2339_s10 = inlined_call_operand.vmem [shape: f32[1,4], index: 10, kind: input, shape index: {}]   ;;  %s2340_s11 = inlined_call_operand.vmem [shape: f32[16,4], index: 11, kind: output, shape index: {}]  }
   0x1   :  { %v1755_v0 = vld [vmem:[%s2329_s3 + $0x38] sm:$0xff]   ;;  %v1756_v1 = vld [vmem:[%s2329_s3 + $0x30] sm:$0xff]   ;;  %v1757_v2 = vld [vmem:[%s2329_s3 + $0x28] sm:$0xff]   ;;  %vm1487_vm3 = vcmask 31744  }
   0x2   :  { %1620 = vmatprep.subr.bf16.mxu0 %v1755_v0  ;;  %v1758_v3 = vld [vmem:[%s2329_s3 + $0x20] sm:$0xff]   ;;  %v40_v5 = vld [vmem:[%s2330_s0 + $0x8] sm:$0xff]  ;;  %v1759_v7 = vld [vmem:[%s2329_s3 + $0x18] sm:$0xff]  }
   0x3   :  { %1621 = vmatpush3.bf16.msra.mxu0 %v1755_v0  ;;  %v39_v4 = vld [vmem:[%s2330_s0] sm:$0xff]  ;;  %v1760_v8 = vld [vmem:[%s2329_s3 + $0x10] sm:$0xff]   ;;  %v1761_v9 = vld [vmem:[%s2329_s3 + $0x8] sm:$0xff]  }
   0x4   :  { %1622 = vmatprep.subr.bf16.mxu0 %v1756_v1  ;;  %v55_v6 = vpack.c.bf16 %v40_v5, %v39_v4  ;;  %v1762_v10 = vld [vmem:[%s2329_s3] sm:$0xff]   ;;  %v41_v11 = vld [vmem:[%s2330_s0 + $0x10] sm:$0xff]  ;;  %v42_v12 = vld [vmem:[%s2330_s0 + $0x18] sm:$0xff] }
   0x5   :  { %v43_v13 = vld [vmem:[%s2330_s0 + $0x20] sm:$0xff]  ;;  %v44_v14 = vld [vmem:[%s2330_s0 + $0x28] sm:$0xff]  ;;  %v56_v15 = vpack.c.bf16 %v42_v12, %v41_v11  ;;  %v45_v17 = vld [vmem:[%s2330_s0 + $0x30] sm:$0xff] }
   0x6   :  { %1636 = vmatprep.mubr.bf16.mxu0 %v55_v6  ;;  %v57_v16 = vpack.c.bf16 %v44_v14, %v43_v13  ;;  %v46_v18 = vld [vmem:[%s2330_s0 + $0x38] sm:$0xff]  ;;  %v47_v19 = vld [vmem:[%s2330_s0 + $0x40] sm:$0xff]  ;;  %v48_v20 = vld [vmem:[%s2330_s0 + $0x48] sm:$0xff] }
   0x7   :  { %1623 = vmatpush3.bf16.msra.mxu0 %v1756_v1  ;;  %v58_v21 = vpack.c.bf16 %v46_v18, %v45_v17  ;;  %v59_v22 = vpack.c.bf16 %v48_v20, %v47_v19  ;;  %v49_v23 = vld [vmem:[%s2330_s0 + $0x50] sm:$0xff]  ;;  %v50_v24 = vld [vmem:[%s2330_s0 + $0x58] sm:$0xff]  ;;  %v51_v25 = vld [vmem:[%s2330_s0 + $0x60] sm:$0xff] }
   0x8   :  { %1624 = vmatprep.subr.bf16.mxu0 %v1757_v2  ;;  %v52_v26 = vld [vmem:[%s2330_s0 + $0x68] sm:$0xff]  ;;  %v60_v27 = vpack.c.bf16 %v50_v24, %v49_v23  ;;  %v53_v29 = vld [vmem:[%s2330_s0 + $0x70] sm:$0xff]  ;;  %v54_v30 = vld [vmem:[%s2330_s0 + $0x78] sm:$0xff] }
   0x9   :  { %v61_v28 = vpack.c.bf16 %v52_v26, %v51_v25  ;;  %v62_v31 = vpack.c.bf16 %v54_v30, %v53_v29  ;;  %v1763_v32 = vld [vmem:[%s2331_s5 + $0x8] sm:$0xff]   ;;  %v1764_v33 = vld [vmem:[%s2331_s5] sm:$0xff]  }
   0xa   :  { %1652 = vmatprep.subr.bf16.mxu1 %v1763_v32  ;;  %v1988_v35 = vld [vmem:[%s2332_s7 + $0x8] sm:$0xff]   ;;  %v1995_v36 = vld [vmem:[%s2332_s7] sm:$0xff]  }
   0xb   :  { %1625 = vmatpush3.bf16.msra.mxu0 %v1757_v2  ;;  %1653 = vmatpush3.bf16.msra.mxu1 %v1763_v32  ;;  %v1539_v37 = vld [vmem:[%s2333_s8] ss:$0 sm:$0xff]  ;;  %v2030_v32 = vld [vmem:[%s2335_s2 + $0x8] sm:$0xff] }
   0xc   :  { %1626 = vmatprep.subr.bf16.mxu0 %v1758_v3  ;;  %1654 = vmatprep.subr.bf16.mxu1 %v1764_v33  ;;  %v1516_v40 = vld [vmem:[%s2334_s4] ss:$0 sm:$0xff] }
   0xd   :  { %498 = vrot.lane.b32.xlu0 %v1539_v37, %s1841_s14  ;;  %v1525_v37 = vld [vmem:[%s2336_s6] ss:$0 sm:$0xff]  ;;  %s1843_s6 = smov 32  }
   0xf   :  { %1627 = vmatpush3.bf16.msra.mxu0 %v1758_v3  ;;  %1655 = vmatpush3.bf16.msra.mxu1 %v1764_v33 }
  0x10   :  { %1628 = vmatprep.subr.bf16.mxu0 %v1759_v7  ;;  %1672 = vmatprep.subr.bf16.mxu1 %v1839_v34 }
  0x13   :  { %1629 = vmatpush3.bf16.msra.mxu0 %v1759_v7 }
  0x14   :  { %1630 = vmatprep.subr.bf16.mxu0 %v1760_v8 }
  0x17   :  { %1631 = vmatpush3.bf16.msra.mxu0 %v1760_v8 }
  0x18   :  { %1632 = vmatprep.subr.bf16.mxu0 %v1761_v9 }
  0x1b   :  { %1633 = vmatpush3.bf16.msra.mxu0 %v1761_v9 }
  0x1c   :  { %1634 = vmatprep.subr.bf16.mxu0 %v1762_v10 }
  0x1f   :  { %1635 = vmatpush3.bf16.msra.mxu0 %v1762_v10 }
  0x20   :  { %1696 = vmatprep.subr.bf16.mxu0 %v1839_v34 }
  0x22   :  { %1637 = vmatmul.mubr.bf16.vlgmr.msra.gmra.mxu0 %v56_v15 }
  0x23   :  { %1640 = vmatprep.mubr.bf16.mxu0 %v57_v16  ;;  %1697 = vmatpush3.bf16.msra.mxu0 %v1988_v35 }
  0x24   :  { %1698 = vmatprep.subr.bf16.mxu0 %v1839_v34 }
  0x27   :  { %1699 = vmatpush3.bf16.msra.mxu0 %v1995_v36 }
  0x28   :  { %1712 = vmatprep.subr.bf16.mxu0 %v1839_v34 }
  0x2a   :  { %1641 = vmatmul.mubr.bf16.gmra.mxu0 %v58_v21 }
  0x2b   :  { %1644 = vmatprep.mubr.bf16.mxu0 %v59_v22 }
  0x32   :  { %1645 = vmatmul.mubr.bf16.gmra.mxu0 %v60_v27 }
  0x33   :  { %1648 = vmatprep.mubr.bf16.mxu0 %v61_v28 }
  0x3a   :  { %1649 = vmatmul.mubr.bf16.gmra.mxu0 %v62_v31  ;;  %v2025_v31 = vld [vmem:[%s2335_s2] sm:$0xff]  ;;  %s1842_s2 = smov 96  }
  0x3b   :  { %1700 = vmatprep.mubr.msk.bf16.mxu0 %vm1840_vm0, %v1839_v34  ;;  %v424_v33 = vpack.c.bf16 %v2030_v32, %v2025_v31 }
  0xe2   :  { %v1638_v38 = vpop.f32.mrf.mxu0 }
  0xe3   :  { %v177_v44 = vadd.f32 %v1638_v38, %v1516_v40 }
  0xe4   :  { %v168_v39 = vpop.f32.mrf.mxu0 }
  0xe5   :  { %v169_v42 = vadd.f32 %v1516_v40, %v168_v39  ;;  %v233_v51 = vmax.f32 %v177_v44, 0.0 }
  0xe6   :  { %v1639_v41 = vpop.f32.mrf.mxu0 }
  0xe7   :  { %v180_v43 = vadd.f32 %v1639_v41, %v1516_v40  ;;  %v231_v49 = vmax.f32 %v169_v42, 0.0 }
  0xe8   :  { %v171_v45 = vpop.f32.mrf.mxu0 }
  0xe9   :  { %v172_v46 = vadd.f32 %v1516_v40, %v171_v45  ;;  %v234_v47 = vmax.f32 %v180_v43, 0.0 }
  0xea   :  { %v1642_v48 = vpop.f32.mrf.mxu0 }
  0xeb   :  { %v232_v50 = vmax.f32 %v172_v46, 0.0  ;;  %v248_v54 = vpack.c.bf16 %v234_v47, %v233_v51  ;;  %v193_v58 = vadd.f32 %v1642_v48, %v1516_v40 }
  0xec   :  { %v184_v52 = vpop.f32.mrf.mxu0 }
  0xed   :  { %v247_v53 = vpack.c.bf16 %v232_v50, %v231_v49  ;;  %v185_v56 = vadd.f32 %v1516_v40, %v184_v52  ;;  %v237_v1 = vmax.f32 %v193_v58, 0.0 }
  0xee   :  { %v1643_v55 = vpop.f32.mrf.mxu0 }
  0xef   :  { %v196_v57 = vadd.f32 %v1643_v55, %v1516_v40  ;;  %1656 = vmatprep.mubr.msk.bf16.mxu1 %vm278_vm1, %v247_v53  ;;  %v235_v63 = vmax.f32 %v185_v56, 0.0 }
  0xf0   :  { %v187_v59 = vpop.f32.mrf.mxu0  ;;  %1657 = vmatmul.mubr.msk.bf16.vlgmr.msra.gmra.mxu1 %vm278_vm1, %v248_v54 }
  0xf1   :  { %v188_v60 = vadd.f32 %v1516_v40, %v187_v59  ;;  %1673 = vmatpush3.bf16.msra.mxu1 %v1988_v35  ;;  %v238_v61 = vmax.f32 %v196_v57, 0.0 }
  0xf2   :  { %v1646_v62 = vpop.f32.mrf.mxu0  ;;  %1674 = vmatprep.subr.bf16.mxu1 %v1839_v34 }
  0xf3   :  { %v236_v0 = vmax.f32 %v188_v60, 0.0  ;;  %v250_v4 = vpack.c.bf16 %v238_v61, %v237_v1  ;;  %v209_v8 = vadd.f32 %v1646_v62, %v1516_v40 }
  0xf4   :  { %v200_v2 = vpop.f32.mrf.mxu0 }
  0xf5   :  { %v249_v3 = vpack.c.bf16 %v236_v0, %v235_v63  ;;  %1675 = vmatpush3.bf16.msra.mxu1 %v1995_v36  ;;  %v201_v6 = vadd.f32 %v1516_v40, %v200_v2  ;;  %v241_v15 = vmax.f32 %v209_v8, 0.0 }
  0xf6   :  { %v1647_v5 = vpop.f32.mrf.mxu0  ;;  %1680 = vmatprep.subr.bf16.mxu1 %v1839_v34 }
  0xf7   :  { %v212_v7 = vadd.f32 %v1647_v5, %v1516_v40  ;;  %1660 = vmatprep.mubr.msk.bf16.mxu1 %vm278_vm1, %v249_v3  ;;  %v239_v13 = vmax.f32 %v201_v6, 0.0  ;;  %v2058_v5 = vpop.permute.xlu0 %498 }
  0xf8   :  { %v203_v9 = vpop.f32.mrf.mxu0  ;;  %1661 = vmatmul.mubr.msk.bf16.gmra.mxu1 %vm278_vm1, %v250_v4 }
  0xf9   :  { %v204_v10 = vadd.f32 %v1516_v40, %v203_v9  ;;  %v242_v11 = vmax.f32 %v212_v7, 0.0 }
  0xfa   :  { %v1650_v12 = vpop.f32.mrf.mxu0 }
  0xfb   :  { %v240_v14 = vmax.f32 %v204_v10, 0.0  ;;  %v252_v18 = vpack.c.bf16 %v242_v11, %v241_v15  ;;  %v225_v22 = vadd.f32 %v1650_v12, %v1516_v40 }
  0xfc   :  { %v216_v16 = vpop.f32.mrf.mxu0 }
  0xfd   :  { %v251_v17 = vpack.c.bf16 %v240_v14, %v239_v13  ;;  %v217_v20 = vadd.f32 %v1516_v40, %v216_v16  ;;  %v245_v28 = vmax.f32 %v225_v22, 0.0 }
  0xfe   :  { %v1651_v19 = vpop.f32.mrf.mxu0 }
  0xff   :  { %v228_v21 = vadd.f32 %v1651_v19, %v1516_v40  ;;  %1664 = vmatprep.mubr.msk.bf16.mxu1 %vm278_vm1, %v251_v17  ;;  %v243_v26 = vmax.f32 %v217_v20, 0.0 }
 0x100   :  { %v219_v23 = vpop.f32.mrf.mxu0  ;;  %1665 = vmatmul.mubr.msk.bf16.gmra.mxu1 %vm278_vm1, %v252_v18 }
 0x101   :  { %v220_v24 = vadd.f32 %v1516_v40, %v219_v23  ;;  %v246_v25 = vmax.f32 %v228_v21, 0.0 }
 0x103   :  { %v244_v27 = vmax.f32 %v220_v24, 0.0  ;;  %v254_v30 = vpack.c.bf16 %v246_v25, %v245_v28 }
 0x105   :  { %v253_v29 = vpack.c.bf16 %v244_v27, %v243_v26 }
 0x107   :  { %1668 = vmatprep.mubr.msk.bf16.mxu1 %vm278_vm1, %v253_v29 }
 0x108   :  { %1669 = vmatmul.mubr.msk.bf16.gmra.mxu1 %vm278_vm1, %v254_v30 }
 0x109   :  { %1676 = vmatprep.mubr.msk.bf16.mxu1 %vm1840_vm0, %v1839_v34 }
 0x110   :  { %1677 = vmatmul.mubr.msk.bf16.vlgmr.msra.gmra.mxu1 %vm278_vm1, %v424_v33 }
 0x111   :  { %1681 = vmatpush3.bf16.msra.mxu1 %v1988_v35  ;;  %1684 = vmatprep.mubr.msk.bf16.mxu1 %vm1840_vm0, %v1839_v34 }
 0x112   :  { %1682 = vmatprep.subr.bf16.mxu1 %v1839_v34 }
 0x115   :  { %1683 = vmatpush3.bf16.msra.mxu1 %v1995_v36 }
 0x116   :  { %1688 = vmatprep.subr.bf16.mxu1 %v1839_v34 }
 0x1b0   :  { %v1658_v38 = vpop.f32.mrf.mxu1 }
 0x1b1   :  { %v346_v39 = vadd.f32 %v1658_v38, %v1525_v37 }
 0x1b2   :  { %v337_v40 = vpop.f32.mrf.mxu1 }
 0x1b3   :  { %403 = vst.msk [vmem:[#allocation2 + $0x10] sm:$0xff] %vm400_vm2, %v346_v39  ;;  %v338_v41 = vadd.f32 %v1525_v37, %v337_v40 }
 0x1b4   :  { %v1659_v42 = vpop.f32.mrf.mxu1 }
 0x1b5   :  { %401 = vst.msk [vmem:[#allocation2] sm:$0xff] %vm400_vm2, %v338_v41  ;;  %v349_v43 = vadd.f32 %v1659_v42, %v1525_v37 }
 0x1b6   :  { %v340_v44 = vpop.f32.mrf.mxu1 }
 0x1b7   :  { %404 = vst.msk [vmem:[#allocation2 + $0x18] sm:$0xff] %vm400_vm2, %v349_v43  ;;  %v341_v45 = vadd.f32 %v1525_v37, %v340_v44 }
 0x1b8   :  { %v1662_v46 = vpop.f32.mrf.mxu1 }
 0x1b9   :  { %402 = vst.msk [vmem:[#allocation2 + $0x8] sm:$0xff] %vm400_vm2, %v341_v45  ;;  %v362_v47 = vadd.f32 %v1662_v46, %v1525_v37 }
 0x1ba   :  { %v353_v48 = vpop.f32.mrf.mxu1 }
 0x1bb   :  { %407 = vst.msk [vmem:[#allocation2 + $0x30] sm:$0xff] %vm400_vm2, %v362_v47  ;;  %v354_v49 = vadd.f32 %v1525_v37, %v353_v48 }
 0x1bc   :  { %v1663_v50 = vpop.f32.mrf.mxu1  ;;  %v481_v13 = vld [vmem:[#allocation2] sm:$0xff] }
 0x1bd   :  { %405 = vst.msk [vmem:[#allocation2 + $0x20] sm:$0xff] %vm400_vm2, %v354_v49  ;;  %v365_v51 = vadd.f32 %v1663_v50, %v1525_v37 }
 0x1be   :  { %v356_v52 = vpop.f32.mrf.mxu1 }
 0x1bf   :  { %408 = vst.msk [vmem:[#allocation2 + $0x38] sm:$0xff] %vm400_vm2, %v365_v51  ;;  %v357_v53 = vadd.f32 %v1525_v37, %v356_v52 }
 0x1c0   :  { %v1666_v54 = vpop.f32.mrf.mxu1  ;;  %v482_v15 = vld [vmem:[#allocation2 + $0x8] sm:$0xff] }
 0x1c1   :  { %406 = vst.msk [vmem:[#allocation2 + $0x28] sm:$0xff] %vm400_vm2, %v357_v53  ;;  %v378_v55 = vadd.f32 %v1666_v54, %v1525_v37 }
 0x1c2   :  { %v369_v56 = vpop.f32.mrf.mxu1 }
 0x1c3   :  { %411 = vst.msk [vmem:[#allocation2 + $0x50] sm:$0xff] %vm400_vm2, %v378_v55  ;;  %v370_v57 = vadd.f32 %v1525_v37, %v369_v56 }
 0x1c4   :  { %v1667_v58 = vpop.f32.mrf.mxu1 }
 0x1c5   :  { %409 = vst.msk [vmem:[#allocation2 + $0x40] sm:$0xff] %vm400_vm2, %v370_v57  ;;  %v381_v59 = vadd.f32 %v1667_v58, %v1525_v37  ;;  %v614_v58 = vld [vmem:[#allocation2 + $0x10] sm:$0xff] }
 0x1c6   :  { %v372_v60 = vpop.f32.mrf.mxu1 }
 0x1c7   :  { %412 = vst.msk [vmem:[#allocation2 + $0x58] sm:$0xff] %vm400_vm2, %v381_v59  ;;  %v373_v61 = vadd.f32 %v1525_v37, %v372_v60  ;;  %v615_v60 = vld [vmem:[#allocation2 + $0x18] sm:$0xff] }
 0x1c8   :  { %v1670_v62 = vpop.f32.mrf.mxu1 }
 0x1c9   :  { %410 = vst.msk [vmem:[#allocation2 + $0x48] sm:$0xff] %vm400_vm2, %v373_v61  ;;  %v394_v63 = vadd.f32 %v1670_v62, %v1525_v37 }
 0x1ca   :  { %v385_v0 = vpop.f32.mrf.mxu1 }
 0x1cb   :  { %415 = vst.msk [vmem:[#allocation2 + $0x70] sm:$0xff] %vm400_vm2, %v394_v63  ;;  %v386_v1 = vadd.f32 %v1525_v37, %v385_v0 }
 0x1cc   :  { %v1671_v2 = vpop.f32.mrf.mxu1 }
 0x1cd   :  { %413 = vst.msk [vmem:[#allocation2 + $0x60] sm:$0xff] %vm400_vm2, %v386_v1  ;;  %v397_v3 = vadd.f32 %v1671_v2, %v1525_v37 }
 0x1ce   :  { %v388_v4 = vpop.f32.mrf.mxu1 }
 0x1cf   :  { %416 = vst.msk [vmem:[#allocation2 + $0x78] sm:$0xff] %vm400_vm2, %v397_v3  ;;  %v389_v6 = vadd.f32 %v1525_v37, %v388_v4 }
 0x1d0   :  { %v474_v7 = vpop.f32.mrf.mxu1 }
 0x1d1   :  { %414 = vst.msk [vmem:[#allocation2 + $0x68] sm:$0xff] %vm400_vm2, %v389_v6  ;;  %v501_v8 = vadd.f32 %v2058_v5, %v474_v7  ;;  %v483_v14 = vadd.f32 %v481_v13, %v474_v7 }
 0x1d2   :  { %v1678_v9 = vpop.f32.mrf.mxu1 }
 0x1d3   :  { %505 = vrot.lane.b32.xlu0 %v501_v8, %s1841_s14  ;;  %v485_v16 = vmul.f32 0.5, %v483_v14 }
 0x1d4   :  { %v477_v10 = vpop.f32.mrf.mxu1 }
 0x1d5   :  { %v502_v11 = vadd.f32 %v2058_v5, %v477_v10  ;;  %v484_v17 = vadd.f32 %v482_v15, %v477_v10  ;;  %1767 = vtanh.f32 %v485_v16 }
 0x1d6   :  { %v1679_v12 = vpop.f32.mrf.mxu1 }
 0x1d7   :  { %507 = vrot.lane.b32.xlu1 %v502_v11, %s1841_s14  ;;  %v486_v18 = vmul.f32 0.5, %v484_v17 }
 0x1d9   :  { %1769 = vtanh.f32 %v486_v18 }
 0x1e2   :  { %v1768_v19 = vpop.eup %1767 }
 0x1e3   :  { %v489_v20 = vadd.f32 1.0, %v1768_v19 }
 0x1e5   :  { %v491_v22 = vmul.f32 0.5, %v489_v20 }
 0x1e6   :  { %v1770_v21 = vpop.eup %1769 }
 0x1e7   :  { %v490_v23 = vadd.f32 1.0, %v1770_v21  ;;  %v525_v43 = vsub.f32 1.0, %v491_v22 }
 0x1e9   :  { %v492_v26 = vmul.f32 0.5, %v490_v23 }
 0x1eb   :  { %v526_v44 = vsub.f32 1.0, %v492_v26 }
 0x245   :  { %v506_v24 = vpop.permute.xlu0 %505 }
 0x246   :  { %v511_v25 = vmul.f32 %v506_v24, %v491_v22 }
 0x248   :  { %515 = vrot.lane.b32.xlu1 %v511_v25, %s1841_s14 }
 0x249   :  { %v508_v27 = vpop.permute.xlu1 %507 }
 0x24a   :  { %v512_v28 = vmul.f32 %v508_v27, %v492_v26 }
 0x24c   :  { %517 = vrot.lane.b32.xlu0 %v512_v28, %s1841_s14 }
 0x2ba   :  { %v516_v29 = vpop.permute.xlu1 %515 }
 0x2bb   :  { %v521_v30 = vadd.f32 %v516_v29, %v481_v13 }
 0x2bd   :  { %1771 = vtanh.f32 %v521_v30 }
 0x2be   :  { %v518_v33 = vpop.permute.xlu0 %517 }
 0x2bf   :  { %v522_v37 = vadd.f32 %v518_v33, %v482_v15 }
 0x2c1   :  { %1773 = vtanh.f32 %v522_v37 }
 0x2ca   :  { %v1772_v38 = vpop.eup %1771 }
 0x2cb   :  { %529 = vrot.lane.b32.xlu1 %v1772_v38, %s1842_s2 }
 0x2ce   :  { %v1774_v39 = vpop.eup %1773 }
 0x2cf   :  { %531 = vrot.lane.b32.xlu0 %v1774_v39, %s1842_s2  ;;  %539 = vrot.lane.b32.xlu1 %v2025_v31, %s1843_s6 }
 0x2d3   :  { %541 = vrot.lane.b32.xlu0 %v2030_v32, %s1843_s6 }
 0x33d   :  { %v530_v40 = vpop.permute.xlu1 %529 }
 0x33e   :  { %v535_v47 = vmul.f32 %v530_v40, %v525_v43  ;;  %v732_v40 = vld [vmem:[#allocation2 + $0x20] sm:$0xff] }
 0x341   :  { %v532_v41 = vpop.permute.xlu0 %531  ;;  %v540_v42 = vpop.permute.xlu1 %539 }
 0x342   :  { %v545_v45 = vmul.f32 %v540_v42, %v491_v22  ;;  %v536_v48 = vmul.f32 %v532_v41, %v526_v44  ;;  %v733_v42 = vld [vmem:[#allocation2 + $0x28] sm:$0xff] }
 0x344   :  { %v2072_v50 = vadd.f32 %v545_v45, %v535_v47 }
 0x345   :  { %v542_v46 = vpop.permute.xlu0 %541 }
 0x346   :  { %v546_v49 = vmul.f32 %v542_v46, %v492_v26 }
 0x348   :  { %v2074_v51 = vadd.f32 %v546_v49, %v536_v48 }
 0x34a   :  { %v565_v52 = vpack.c.bf16 %v2074_v51, %v2072_v50 }
 0x34c   :  { %567 = vrot.lane.b32.xlu1 %v565_v52, %s1842_s2 }
 0x3be   :  { %v568_v31 = vpop.permute.xlu1 %567 }
 0x3bf   :  { %1685 = vmatmul.mubr.msk.bf16.vlgmr.msra.gmra.mxu1 %vm278_vm1, %v568_v31 }
 0x3c0   :  { %1689 = vmatpush3.bf16.msra.mxu1 %v1988_v35  ;;  %1692 = vmatprep.mubr.msk.bf16.mxu1 %vm1840_vm0, %v1839_v34 }
 0x3c1   :  { %1690 = vmatprep.subr.bf16.mxu1 %v1839_v34 }
 0x3c4   :  { %1691 = vmatpush3.bf16.msra.mxu1 %v1995_v36 }
 0x3c5   :  { %1704 = vmatprep.subr.bf16.mxu1 %v1839_v34 }
 0x47f   :  { %v606_v32 = vpop.f32.mrf.mxu1 }
 0x480   :  { %v626_v53 = vadd.f32 %v606_v32, %v2058_v5  ;;  %v616_v59 = vadd.f32 %v614_v58, %v606_v32 }
 0x481   :  { %v1686_v54 = vpop.f32.mrf.mxu1 }
 0x482   :  { %630 = vrot.lane.b32.xlu0 %v626_v53, %s1841_s14  ;;  %v618_v61 = vmul.f32 0.5, %v616_v59 }
 0x483   :  { %v609_v55 = vpop.f32.mrf.mxu1 }
 0x484   :  { %v627_v56 = vadd.f32 %v609_v55, %v2058_v5  ;;  %v617_v62 = vadd.f32 %v615_v60, %v609_v55  ;;  %1775 = vtanh.f32 %v618_v61 }
 0x485   :  { %v1687_v57 = vpop.f32.mrf.mxu1 }
 0x486   :  { %632 = vrot.lane.b32.xlu1 %v627_v56, %s1841_s14  ;;  %v619_v63 = vmul.f32 0.5, %v617_v62 }
 0x488   :  { %1777 = vtanh.f32 %v619_v63 }
 0x491   :  { %v1776_v0 = vpop.eup %1775 }
 0x492   :  { %v622_v1 = vadd.f32 1.0, %v1776_v0 }
 0x494   :  { %v624_v3 = vmul.f32 0.5, %v622_v1 }
 0x495   :  { %v1778_v2 = vpop.eup %1777 }
 0x496   :  { %v623_v4 = vadd.f32 1.0, %v1778_v2  ;;  %v650_v18 = vsub.f32 1.0, %v624_v3  ;;  %v662_v22 = vmul.f32 %v624_v3, %v2072_v50 }
 0x498   :  { %v625_v8 = vmul.f32 0.5, %v623_v4 }
 0x49a   :  { %v651_v20 = vsub.f32 1.0, %v625_v8  ;;  %v663_v23 = vmul.f32 %v625_v8, %v2074_v51 }
 0x4f4   :  { %v631_v6 = vpop.permute.xlu0 %630 }
 0x4f5   :  { %v636_v7 = vmul.f32 %v631_v6, %v624_v3 }
 0x4f7   :  { %640 = vrot.lane.b32.xlu0 %v636_v7, %s1841_s14 }
 0x4f8   :  { %v633_v9 = vpop.permute.xlu1 %632 }
 0x4f9   :  { %v637_v10 = vmul.f32 %v633_v9, %v625_v8 }
 0x4fb   :  { %642 = vrot.lane.b32.xlu1 %v637_v10, %s1841_s14 }
 0x569   :  { %v641_v11 = vpop.permute.xlu0 %640 }
 0x56a   :  { %v646_v12 = vadd.f32 %v641_v11, %v614_v58 }
 0x56c   :  { %1779 = vtanh.f32 %v646_v12 }
 0x56d   :  { %v643_v13 = vpop.permute.xlu1 %642 }
 0x56e   :  { %v647_v14 = vadd.f32 %v643_v13, %v615_v60 }
 0x570   :  { %1781 = vtanh.f32 %v647_v14 }
 0x579   :  { %v1780_v15 = vpop.eup %1779 }
 0x57a   :  { %654 = vrot.lane.b32.xlu0 %v1780_v15, %s1842_s2 }
 0x57d   :  { %v1782_v16 = vpop.eup %1781 }
 0x57e   :  { %656 = vrot.lane.b32.xlu1 %v1782_v16, %s1842_s2 }
 0x5ec   :  { %v655_v17 = vpop.permute.xlu0 %654 }
 0x5ed   :  { %v660_v19 = vmul.f32 %v655_v17, %v650_v18  ;;  %v850_v17 = vld [vmem:[#allocation2 + $0x30] sm:$0xff] }
 0x5ef   :  { %v2096_v25 = vadd.f32 %v662_v22, %v660_v19  ;;  %v851_v19 = vld [vmem:[#allocation2 + $0x38] sm:$0xff] }
 0x5f0   :  { %v657_v21 = vpop.permute.xlu1 %656 }
 0x5f1   :  { %v661_v24 = vmul.f32 %v657_v21, %v651_v20 }
 0x5f3   :  { %v2098_v26 = vadd.f32 %v663_v23, %v661_v24 }
 0x5f5   :  { %v683_v27 = vpack.c.bf16 %v2098_v26, %v2096_v25 }
 0x5f7   :  { %685 = vrot.lane.b32.xlu0 %v683_v27, %s1842_s2 }
 0x669   :  { %v686_v28 = vpop.permute.xlu0 %685 }
 0x66a   :  { %1693 = vmatmul.mubr.msk.bf16.vlgmr.msra.gmra.mxu1 %vm278_vm1, %v686_v28 }
 0x66b   :  { %1705 = vmatpush3.bf16.msra.mxu1 %v1988_v35  ;;  %1708 = vmatprep.mubr.msk.bf16.mxu1 %vm1840_vm0, %v1839_v34 }
 0x66c   :  { %1706 = vmatprep.subr.bf16.mxu1 %v1839_v34 }
 0x66f   :  { %1707 = vmatpush3.bf16.msra.mxu1 %v1995_v36 }
 0x670   :  { %1720 = vmatprep.subr.bf16.mxu1 %v1839_v34 }
 0x72a   :  { %v724_v29 = vpop.f32.mrf.mxu1 }
 0x72b   :  { %v744_v30 = vadd.f32 %v724_v29, %v2058_v5  ;;  %v734_v41 = vadd.f32 %v732_v40, %v724_v29 }
 0x72c   :  { %v1694_v33 = vpop.f32.mrf.mxu1 }
 0x72d   :  { %748 = vrot.lane.b32.xlu1 %v744_v30, %s1841_s14  ;;  %v736_v43 = vmul.f32 0.5, %v734_v41 }
 0x72e   :  { %v727_v37 = vpop.f32.mrf.mxu1 }
 0x72f   :  { %v745_v38 = vadd.f32 %v727_v37, %v2058_v5  ;;  %v735_v44 = vadd.f32 %v733_v42, %v727_v37  ;;  %1783 = vtanh.f32 %v736_v43 }
 0x730   :  { %v1695_v39 = vpop.f32.mrf.mxu1 }
 0x731   :  { %750 = vrot.lane.b32.xlu0 %v745_v38, %s1841_s14  ;;  %v737_v45 = vmul.f32 0.5, %v735_v44 }
 0x733   :  { %1785 = vtanh.f32 %v737_v45 }
 0x73c   :  { %v1784_v46 = vpop.eup %1783 }
 0x73d   :  { %v740_v47 = vadd.f32 1.0, %v1784_v46 }
 0x73f   :  { %v742_v49 = vmul.f32 0.5, %v740_v47 }
 0x740   :  { %v1786_v48 = vpop.eup %1785 }
 0x741   :  { %v741_v52 = vadd.f32 1.0, %v1786_v48  ;;  %v768_v63 = vsub.f32 1.0, %v742_v49  ;;  %v780_v3 = vmul.f32 %v742_v49, %v2096_v25 }
 0x743   :  { %v743_v53 = vmul.f32 0.5, %v741_v52 }
 0x745   :  { %v769_v1 = vsub.f32 1.0, %v743_v53  ;;  %v781_v4 = vmul.f32 %v743_v53, %v2098_v26 }
 0x79f   :  { %v749_v31 = vpop.permute.xlu1 %748 }
 0x7a0   :  { %v754_v32 = vmul.f32 %v749_v31, %v742_v49 }
 0x7a2   :  { %758 = vrot.lane.b32.xlu1 %v754_v32, %s1841_s14 }
 0x7a3   :  { %v751_v54 = vpop.permute.xlu0 %750 }
 0x7a4   :  { %v755_v55 = vmul.f32 %v751_v54, %v743_v53 }
 0x7a6   :  { %760 = vrot.lane.b32.xlu0 %v755_v55, %s1841_s14 }
 0x814   :  { %v759_v56 = vpop.permute.xlu1 %758 }
 0x815   :  { %v764_v57 = vadd.f32 %v759_v56, %v732_v40 }
 0x817   :  { %1787 = vtanh.f32 %v764_v57 }
 0x818   :  { %v761_v58 = vpop.permute.xlu0 %760 }
 0x819   :  { %v765_v59 = vadd.f32 %v761_v58, %v733_v42 }
 0x81b   :  { %1789 = vtanh.f32 %v765_v59 }
 0x824   :  { %v1788_v60 = vpop.eup %1787 }
 0x825   :  { %772 = vrot.lane.b32.xlu1 %v1788_v60, %s1842_s2 }
 0x828   :  { %v1790_v61 = vpop.eup %1789 }
 0x829   :  { %774 = vrot.lane.b32.xlu0 %v1790_v61, %s1842_s2 }
 0x897   :  { %v773_v62 = vpop.permute.xlu1 %772 }
 0x898   :  { %v778_v0 = vmul.f32 %v773_v62, %v768_v63 }
 0x89a   :  { %v2120_v7 = vadd.f32 %v780_v3, %v778_v0  ;;  %v968_v0 = vld [vmem:[#allocation2 + $0x40] sm:$0xff] }
 0x89b   :  { %v775_v2 = vpop.permute.xlu0 %774 }
 0x89c   :  { %v779_v6 = vmul.f32 %v775_v2, %v769_v1  ;;  %v969_v2 = vld [vmem:[#allocation2 + $0x48] sm:$0xff] }
 0x89e   :  { %v2122_v8 = vadd.f32 %v781_v4, %v779_v6 }
 0x8a0   :  { %v801_v9 = vpack.c.bf16 %v2122_v8, %v2120_v7 }
 0x8a2   :  { %803 = vrot.lane.b32.xlu1 %v801_v9, %s1842_s2 }
 0x914   :  { %v804_v10 = vpop.permute.xlu1 %803 }
 0x915   :  { %1701 = vmatmul.mubr.msk.bf16.vlgmr.msra.gmra.mxu0 %vm278_vm1, %v804_v10 }
 0x916   :  { %1713 = vmatpush3.bf16.msra.mxu0 %v1988_v35  ;;  %1716 = vmatprep.mubr.msk.bf16.mxu0 %vm1840_vm0, %v1839_v34 }
 0x917   :  { %1714 = vmatprep.subr.bf16.mxu0 %v1839_v34 }
 0x91a   :  { %1715 = vmatpush3.bf16.msra.mxu0 %v1995_v36 }
 0x91b   :  { %1728 = vmatprep.subr.bf16.mxu0 %v1839_v34 }
 0x9d5   :  { %v842_v11 = vpop.f32.mrf.mxu0 }
 0x9d6   :  { %v862_v12 = vadd.f32 %v842_v11, %v2058_v5  ;;  %v852_v18 = vadd.f32 %v850_v17, %v842_v11 }
 0x9d7   :  { %v1702_v13 = vpop.f32.mrf.mxu0 }
 0x9d8   :  { %866 = vrot.lane.b32.xlu0 %v862_v12, %s1841_s14  ;;  %v854_v20 = vmul.f32 0.5, %v852_v18 }
 0x9d9   :  { %v845_v14 = vpop.f32.mrf.mxu0 }
 0x9da   :  { %v863_v15 = vadd.f32 %v845_v14, %v2058_v5  ;;  %v853_v21 = vadd.f32 %v851_v19, %v845_v14  ;;  %1791 = vtanh.f32 %v854_v20 }
 0x9db   :  { %v1703_v16 = vpop.f32.mrf.mxu0 }
 0x9dc   :  { %868 = vrot.lane.b32.xlu1 %v863_v15, %s1841_s14  ;;  %v855_v22 = vmul.f32 0.5, %v853_v21 }
 0x9de   :  { %1793 = vtanh.f32 %v855_v22 }
 0x9e7   :  { %v1792_v23 = vpop.eup %1791 }
 0x9e8   :  { %v858_v24 = vadd.f32 1.0, %v1792_v23 }
 0x9ea   :  { %v860_v28 = vmul.f32 0.5, %v858_v24 }
 0x9eb   :  { %v1794_v27 = vpop.eup %1793 }
 0x9ec   :  { %v859_v29 = vadd.f32 1.0, %v1794_v27  ;;  %v886_v47 = vsub.f32 1.0, %v860_v28  ;;  %v898_v31 = vmul.f32 %v860_v28, %v2120_v7 }
 0x9ee   :  { %v861_v37 = vmul.f32 0.5, %v859_v29 }
 0x9f0   :  { %v887_v49 = vsub.f32 1.0, %v861_v37  ;;  %v899_v32 = vmul.f32 %v861_v37, %v2122_v8 }
 0xa4a   :  { %v867_v30 = vpop.permute.xlu0 %866 }
 0xa4b   :  { %v872_v33 = vmul.f32 %v867_v30, %v860_v28 }
 0xa4d   :  { %876 = vrot.lane.b32.xlu0 %v872_v33, %s1841_s14 }
 0xa4e   :  { %v869_v38 = vpop.permute.xlu1 %868 }
 0xa4f   :  { %v873_v39 = vmul.f32 %v869_v38, %v861_v37 }
 0xa51   :  { %878 = vrot.lane.b32.xlu1 %v873_v39, %s1841_s14 }
 0xabf   :  { %v877_v40 = vpop.permute.xlu0 %876 }
 0xac0   :  { %v882_v41 = vadd.f32 %v877_v40, %v850_v17 }
 0xac2   :  { %1795 = vtanh.f32 %v882_v41 }
 0xac3   :  { %v879_v42 = vpop.permute.xlu1 %878 }
 0xac4   :  { %v883_v43 = vadd.f32 %v879_v42, %v851_v19 }
 0xac6   :  { %1797 = vtanh.f32 %v883_v43 }
 0xacf   :  { %v1796_v44 = vpop.eup %1795 }
 0xad0   :  { %890 = vrot.lane.b32.xlu0 %v1796_v44, %s1842_s2 }
 0xad3   :  { %v1798_v45 = vpop.eup %1797 }
 0xad4   :  { %892 = vrot.lane.b32.xlu1 %v1798_v45, %s1842_s2 }
 0xb42   :  { %v891_v46 = vpop.permute.xlu0 %890 }
 0xb43   :  { %v896_v48 = vmul.f32 %v891_v46, %v886_v47 }
 0xb45   :  { %v2144_v54 = vadd.f32 %v898_v31, %v896_v48  ;;  %v1087_v31 = vld [vmem:[#allocation2 + $0x58] sm:$0xff] }
 0xb46   :  { %v893_v52 = vpop.permute.xlu1 %892 }
 0xb47   :  { %v897_v53 = vmul.f32 %v893_v52, %v887_v49 }
 0xb49   :  { %v2146_v55 = vadd.f32 %v899_v32, %v897_v53 }
 0xb4b   :  { %v919_v56 = vpack.c.bf16 %v2146_v55, %v2144_v54 }
 0xb4d   :  { %921 = vrot.lane.b32.xlu0 %v919_v56, %s1842_s2 }
 0xbbf   :  { %v922_v57 = vpop.permute.xlu0 %921 }
 0xbc0   :  { %1709 = vmatmul.mubr.msk.bf16.vlgmr.msra.gmra.mxu1 %vm278_vm1, %v922_v57 }
 0xbc1   :  { %1721 = vmatpush3.bf16.msra.mxu1 %v1988_v35  ;;  %1724 = vmatprep.mubr.msk.bf16.mxu1 %vm1840_vm0, %v1839_v34 }
 0xbc2   :  { %1722 = vmatprep.subr.bf16.mxu1 %v1839_v34 }
 0xbc5   :  { %1723 = vmatpush3.bf16.msra.mxu1 %v1995_v36 }
 0xc80   :  { %v960_v58 = vpop.f32.mrf.mxu1 }
 0xc81   :  { %v980_v59 = vadd.f32 %v960_v58, %v2058_v5  ;;  %v970_v1 = vadd.f32 %v968_v0, %v960_v58 }
 0xc82   :  { %v1710_v60 = vpop.f32.mrf.mxu1 }
 0xc83   :  { %984 = vrot.lane.b32.xlu1 %v980_v59, %s1841_s14  ;;  %v972_v3 = vmul.f32 0.5, %v970_v1 }
 0xc84   :  { %v963_v61 = vpop.f32.mrf.mxu1 }
 0xc85   :  { %v981_v62 = vadd.f32 %v963_v61, %v2058_v5  ;;  %v971_v4 = vadd.f32 %v969_v2, %v963_v61  ;;  %1799 = vtanh.f32 %v972_v3 }
 0xc86   :  { %v1711_v63 = vpop.f32.mrf.mxu1 }
 0xc87   :  { %986 = vrot.lane.b32.xlu0 %v981_v62, %s1841_s14  ;;  %v973_v6 = vmul.f32 0.5, %v971_v4 }
 0xc89   :  { %1801 = vtanh.f32 %v973_v6 }
 0xc92   :  { %v1800_v9 = vpop.eup %1799 }
 0xc93   :  { %v976_v10 = vadd.f32 1.0, %v1800_v9 }
 0xc95   :  { %v978_v12 = vmul.f32 0.5, %v976_v10 }
 0xc96   :  { %v1802_v11 = vpop.eup %1801 }
 0xc97   :  { %v977_v13 = vadd.f32 1.0, %v1802_v11  ;;  %v1004_v28 = vsub.f32 1.0, %v978_v12  ;;  %v1016_v37 = vmul.f32 %v978_v12, %v2144_v54 }
 0xc99   :  { %v979_v16 = vmul.f32 0.5, %v977_v13 }
 0xc9b   :  { %v1005_v30 = vsub.f32 1.0, %v979_v16  ;;  %v1017_v38 = vmul.f32 %v979_v16, %v2146_v55 }
 0xcf5   :  { %v985_v14 = vpop.permute.xlu1 %984 }
 0xcf6   :  { %v990_v15 = vmul.f32 %v985_v14, %v978_v12 }
 0xcf8   :  { %994 = vrot.lane.b32.xlu1 %v990_v15, %s1841_s14 }
 0xcf9   :  { %v987_v17 = vpop.permute.xlu0 %986 }
 0xcfa   :  { %v991_v18 = vmul.f32 %v987_v17, %v979_v16 }
 0xcfc   :  { %996 = vrot.lane.b32.xlu0 %v991_v18, %s1841_s14 }
 0xd6a   :  { %v995_v19 = vpop.permute.xlu1 %994 }
 0xd6b   :  { %v1000_v20 = vadd.f32 %v995_v19, %v968_v0 }
 0xd6d   :  { %1803 = vtanh.f32 %v1000_v20 }
 0xd6e   :  { %v997_v21 = vpop.permute.xlu0 %996 }
 0xd6f   :  { %v1001_v22 = vadd.f32 %v997_v21, %v969_v2 }
 0xd71   :  { %1805 = vtanh.f32 %v1001_v22 }
 0xd7a   :  { %v1804_v23 = vpop.eup %1803 }
 0xd7b   :  { %1008 = vrot.lane.b32.xlu1 %v1804_v23, %s1842_s2 }
 0xd7e   :  { %v1806_v24 = vpop.eup %1805 }
 0xd7f   :  { %1010 = vrot.lane.b32.xlu0 %v1806_v24, %s1842_s2 }
 0xded   :  { %v1009_v27 = vpop.permute.xlu1 %1008 }
 0xdee   :  { %v1014_v29 = vmul.f32 %v1009_v27, %v1004_v28 }
 0xdf0   :  { %v2167_v40 = vadd.f32 %v1016_v37, %v1014_v29  ;;  %v1205_v37 = vld [vmem:[#allocation2 + $0x68] sm:$0xff] }
 0xdf1   :  { %v1011_v33 = vpop.permute.xlu0 %1010 }
 0xdf2   :  { %v1015_v39 = vmul.f32 %v1011_v33, %v1005_v30  ;;  %v1204_v30 = vld [vmem:[#allocation2 + $0x60] sm:$0xff] }
 0xdf4   :  { %v2169_v41 = vadd.f32 %v1017_v38, %v1015_v39 }
 0xdf6   :  { %v1037_v42 = vpack.c.bf16 %v2169_v41, %v2167_v40 }
 0xdf8   :  { %1039 = vrot.lane.b32.xlu1 %v1037_v42, %s1842_s2 }
 0xe6a   :  { %v1040_v43 = vpop.permute.xlu1 %1039 }
 0xe6b   :  { %1717 = vmatmul.mubr.msk.bf16.vlgmr.msra.gmra.mxu0 %vm278_vm1, %v1040_v43 }
 0xe6c   :  { %1729 = vmatpush3.bf16.msra.mxu0 %v1988_v35  ;;  %1732 = vmatprep.mubr.msk.bf16.mxu0 %vm1840_vm0, %v1839_v34  ;;  %v1086_v35 = vld [vmem:[#allocation2 + $0x50] sm:$0xff] }
 0xe6d   :  { %1730 = vmatprep.subr.bf16.mxu0 %v1839_v34 }
 0xe70   :  { %1731 = vmatpush3.bf16.msra.mxu0 %v1995_v36 }
 0xf2b   :  { %v1078_v44 = vpop.f32.mrf.mxu0 }
 0xf2c   :  { %v1098_v45 = vadd.f32 %v1078_v44, %v2058_v5  ;;  %v1088_v52 = vadd.f32 %v1086_v35, %v1078_v44 }
 0xf2d   :  { %v1718_v46 = vpop.f32.mrf.mxu0 }
 0xf2e   :  { %1102 = vrot.lane.b32.xlu0 %v1098_v45, %s1841_s14  ;;  %v1090_v32 = vmul.f32 0.5, %v1088_v52 }
 0xf2f   :  { %v1081_v47 = vpop.f32.mrf.mxu0 }
 0xf30   :  { %v1099_v48 = vadd.f32 %v1081_v47, %v2058_v5  ;;  %v1089_v53 = vadd.f32 %v1087_v31, %v1081_v47  ;;  %1807 = vtanh.f32 %v1090_v32 }
 0xf31   :  { %v1719_v49 = vpop.f32.mrf.mxu0 }
 0xf32   :  { %1104 = vrot.lane.b32.xlu1 %v1099_v48, %s1841_s14  ;;  %v1091_v34 = vmul.f32 0.5, %v1089_v53 }
 0xf34   :  { %1809 = vtanh.f32 %v1091_v34 }
 0xf3d   :  { %v1808_v36 = vpop.eup %1807 }
 0xf3e   :  { %v1094_v56 = vadd.f32 1.0, %v1808_v36 }
 0xf40   :  { %v1096_v58 = vmul.f32 0.5, %v1094_v56 }
 0xf41   :  { %v1810_v57 = vpop.eup %1809 }
 0xf42   :  { %v1095_v59 = vadd.f32 1.0, %v1810_v57  ;;  %v1122_v11 = vsub.f32 1.0, %v1096_v58  ;;  %v1134_v15 = vmul.f32 %v1096_v58, %v2167_v40 }
 0xf44   :  { %v1097_v62 = vmul.f32 0.5, %v1095_v59 }
 0xf46   :  { %v1123_v13 = vsub.f32 1.0, %v1097_v62  ;;  %v1135_v16 = vmul.f32 %v1097_v62, %v2169_v41 }
 0xfa0   :  { %v1103_v60 = vpop.permute.xlu0 %1102 }
 0xfa1   :  { %v1108_v61 = vmul.f32 %v1103_v60, %v1096_v58 }
 0xfa3   :  { %1112 = vrot.lane.b32.xlu0 %v1108_v61, %s1841_s14 }
 0xfa4   :  { %v1105_v63 = vpop.permute.xlu1 %1104 }
 0xfa5   :  { %v1109_v0 = vmul.f32 %v1105_v63, %v1097_v62 }
 0xfa7   :  { %1114 = vrot.lane.b32.xlu1 %v1109_v0, %s1841_s14 }
0x1015   :  { %v1113_v1 = vpop.permute.xlu0 %1112 }
0x1016   :  { %v1118_v2 = vadd.f32 %v1113_v1, %v1086_v35 }
0x1018   :  { %1811 = vtanh.f32 %v1118_v2 }
0x1019   :  { %v1115_v3 = vpop.permute.xlu1 %1114 }
0x101a   :  { %v1119_v4 = vadd.f32 %v1115_v3, %v1087_v31 }
0x101c   :  { %1813 = vtanh.f32 %v1119_v4 }
0x1025   :  { %v1812_v6 = vpop.eup %1811 }
0x1026   :  { %1126 = vrot.lane.b32.xlu0 %v1812_v6, %s1842_s2 }
0x1029   :  { %v1814_v9 = vpop.eup %1813 }
0x102a   :  { %1128 = vrot.lane.b32.xlu1 %v1814_v9, %s1842_s2  ;;  %v1844_v9 = vmov 0  }
0x102b   :  { %1753 = vset.pattern.permute.xlu0 %v1844_v9  ;;  %1754 = vset.pattern.permute.xlu1 %v1844_v9 }
0x1098   :  { %v1127_v10 = vpop.permute.xlu0 %1126 }
0x1099   :  { %v1132_v12 = vmul.f32 %v1127_v10, %v1122_v11 }
0x109b   :  { %v2190_v18 = vadd.f32 %v1134_v15, %v1132_v12 }
0x109c   :  { %v1129_v14 = vpop.permute.xlu1 %1128 }
0x109d   :  { %v1133_v17 = vmul.f32 %v1129_v14, %v1123_v13 }
0x109f   :  { %v2192_v19 = vadd.f32 %v1135_v16, %v1133_v17  ;;  %v1322_v16 = vld [vmem:[#allocation2 + $0x70] sm:$0xff] }
0x10a1   :  { %v1155_v20 = vpack.c.bf16 %v2192_v19, %v2190_v18 }
0x10a3   :  { %1157 = vrot.lane.b32.xlu0 %v1155_v20, %s1842_s2  ;;  %v1323_v20 = vld [vmem:[#allocation2 + $0x78] sm:$0xff] }
0x1115   :  { %v1158_v21 = vpop.permute.xlu0 %1157 }
0x1116   :  { %1725 = vmatmul.mubr.msk.bf16.vlgmr.msra.gmra.mxu1 %vm278_vm1, %v1158_v21 }
0x11d6   :  { %v1196_v22 = vpop.f32.mrf.mxu1 }
0x11d7   :  { %v1216_v23 = vadd.f32 %v1196_v22, %v2058_v5  ;;  %v1206_v33 = vadd.f32 %v1204_v30, %v1196_v22 }
0x11d8   :  { %v1726_v24 = vpop.f32.mrf.mxu1 }
0x11d9   :  { %1220 = vrot.lane.b32.xlu1 %v1216_v23, %s1841_s14  ;;  %v1208_v38 = vmul.f32 0.5, %v1206_v33 }
0x11da   :  { %v1199_v27 = vpop.f32.mrf.mxu1 }
0x11db   :  { %v1217_v28 = vadd.f32 %v1199_v27, %v2058_v5  ;;  %v1207_v39 = vadd.f32 %v1205_v37, %v1199_v27  ;;  %1815 = vtanh.f32 %v1208_v38 }
0x11dc   :  { %v1727_v29 = vpop.f32.mrf.mxu1 }
0x11dd   :  { %1222 = vrot.lane.b32.xlu0 %v1217_v28, %s1841_s14  ;;  %v1209_v42 = vmul.f32 0.5, %v1207_v39  ;;  %v549_v39 = vld [vmem:[%s2337_s1] sm:$0xff] }
0x11df   :  { %1817 = vtanh.f32 %v1209_v42 }
0x11e8   :  { %v1816_v43 = vpop.eup %1815 }
0x11e9   :  { %v1212_v44 = vadd.f32 1.0, %v1816_v43  ;;  %v1542_v43 = vld [vmem:[%s2337_s1 + $0x18] sm:$0xff] }
0x11eb   :  { %v1214_v46 = vmul.f32 0.5, %v1212_v44  ;;  %v1541_v44 = vld [vmem:[%s2337_s1 + $0x10] sm:$0xff] }
0x11ec   :  { %v1818_v45 = vpop.eup %1817 }
0x11ed   :  { %v1213_v47 = vadd.f32 1.0, %v1818_v45  ;;  %v1240_v59 = vsub.f32 1.0, %v1214_v46  ;;  %v1252_v63 = vmul.f32 %v1214_v46, %v2190_v18  ;;  %v1545_v45 = vld [vmem:[%s2337_s1 + $0x28] sm:$0xff] }
0x11ef   :  { %v1215_v35 = vmul.f32 0.5, %v1213_v47  ;;  %v1548_v47 = vld [vmem:[%s2337_s1 + $0x38] sm:$0xff] }
0x11f1   :  { %v1241_v61 = vsub.f32 1.0, %v1215_v35  ;;  %v1253_v0 = vmul.f32 %v1215_v35, %v2192_v19 }
0x124b   :  { %v1221_v48 = vpop.permute.xlu1 %1220 }
0x124c   :  { %v1226_v49 = vmul.f32 %v1221_v48, %v1214_v46  ;;  %v550_v46 = vld [vmem:[%s2337_s1 + $0x8] sm:$0xff]  ;;  %v1544_v48 = vld [vmem:[%s2337_s1 + $0x20] sm:$0xff] }
0x124e   :  { %1230 = vrot.lane.b32.xlu1 %v1226_v49, %s1841_s14  ;;  %v1551_v49 = vld [vmem:[%s2337_s1 + $0x48] sm:$0xff] }
0x124f   :  { %v1223_v52 = vpop.permute.xlu0 %1222 }
0x1250   :  { %v1227_v31 = vmul.f32 %v1223_v52, %v1215_v35  ;;  %v1547_v35 = vld [vmem:[%s2337_s1 + $0x30] sm:$0xff]  ;;  %v1554_v52 = vld [vmem:[%s2337_s1 + $0x58] sm:$0xff] }
0x1252   :  { %1232 = vrot.lane.b32.xlu0 %v1227_v31, %s1841_s14  ;;  %v1550_v31 = vld [vmem:[%s2337_s1 + $0x40] sm:$0xff] }
0x12c0   :  { %v1231_v32 = vpop.permute.xlu1 %1230 }
0x12c1   :  { %v1236_v53 = vadd.f32 %v1231_v32, %v1204_v30  ;;  %v1557_v32 = vld [vmem:[%s2337_s1 + $0x68] sm:$0xff] }
0x12c3   :  { %1819 = vtanh.f32 %v1236_v53  ;;  %v1553_v53 = vld [vmem:[%s2337_s1 + $0x50] sm:$0xff] }
0x12c4   :  { %v1233_v34 = vpop.permute.xlu0 %1232 }
0x12c5   :  { %v1237_v36 = vadd.f32 %v1233_v34, %v1205_v37  ;;  %v1556_v34 = vld [vmem:[%s2337_s1 + $0x60] sm:$0xff] }
0x12c7   :  { %1821 = vtanh.f32 %v1237_v36  ;;  %v1559_v36 = vld [vmem:[%s2337_s1 + $0x70] sm:$0xff] }
0x12d0   :  { %v1820_v56 = vpop.eup %1819 }
0x12d1   :  { %1244 = vrot.lane.b32.xlu1 %v1820_v56, %s1842_s2  ;;  %v1560_v56 = vld [vmem:[%s2337_s1 + $0x78] sm:$0xff] }
0x12d4   :  { %v1822_v57 = vpop.eup %1821 }
0x12d5   :  { %1246 = vrot.lane.b32.xlu0 %v1822_v57, %s1842_s2 }
0x1343   :  { %v1245_v58 = vpop.permute.xlu1 %1244 }
0x1344   :  { %v1250_v60 = vmul.f32 %v1245_v58, %v1240_v59 }
0x1346   :  { %v2208_v2 = vadd.f32 %v1252_v63, %v1250_v60  ;;  %v1393_v63 = vld [vmem:[%s2338_s9 + $0x10] sm:$0xff] }
0x1347   :  { %v1247_v62 = vpop.permute.xlu0 %1246 }
0x1348   :  { %v1251_v1 = vmul.f32 %v1247_v62, %v1241_v61  ;;  %v1394_v62 = vld [vmem:[%s2338_s9 + $0x18] sm:$0xff] }
0x1349   :  { %1736 = vmatprep.subr.mxu1 %v1394_v62 }
0x134a   :  { %v2210_v3 = vadd.f32 %v1253_v0, %v1251_v1  ;;  %1737 = vmatpush3.msra.mxu1 %v1394_v62  ;;  %v1392_v0 = vld [vmem:[%s2338_s9 + $0x8] sm:$0xff] }
0x134b   :  { %1738 = vmatprep.subr.mxu1 %v1393_v63 }
0x134c   :  { %v1273_v4 = vpack.c.bf16 %v2210_v3, %v2208_v2  ;;  %1739 = vmatpush3.msra.mxu1 %v1393_v63 }
0x134d   :  { %1740 = vmatprep.subr.mxu1 %v1392_v0 }
0x134e   :  { %1275 = vrot.lane.b32.xlu1 %v1273_v4, %s1842_s2  ;;  %1741 = vmatpush3.msra.mxu1 %v1392_v0 }
0x13c0   :  { %v1276_v6 = vpop.permute.xlu1 %1275 }
0x13c1   :  { %1733 = vmatmul.mubr.msk.bf16.vlgmr.msra.gmra.mxu0 %vm278_vm1, %v1276_v6 }
0x1481   :  { %v1314_v10 = vpop.f32.mrf.mxu0 }
0x1482   :  { %v1334_v11 = vadd.f32 %v1314_v10, %v2058_v5  ;;  %v1324_v17 = vadd.f32 %v1322_v16, %v1314_v10 }
0x1483   :  { %v1734_v12 = vpop.f32.mrf.mxu0 }
0x1484   :  { %1338 = vrot.lane.b32.xlu0 %v1334_v11, %s1841_s14  ;;  %v1326_v21 = vmul.f32 0.5, %v1324_v17 }
0x1485   :  { %v1317_v13 = vpop.f32.mrf.mxu0 }
0x1486   :  { %v1335_v14 = vadd.f32 %v1317_v13, %v2058_v5  ;;  %v1325_v22 = vadd.f32 %v1323_v20, %v1317_v13  ;;  %1823 = vtanh.f32 %v1326_v21 }
0x1487   :  { %v1735_v15 = vpop.f32.mrf.mxu0 }
0x1488   :  { %1340 = vrot.lane.b32.xlu1 %v1335_v14, %s1841_s14  ;;  %v1327_v23 = vmul.f32 0.5, %v1325_v22 }
0x148a   :  { %1825 = vtanh.f32 %v1327_v23 }
0x1493   :  { %v1824_v24 = vpop.eup %1823 }
0x1494   :  { %v1330_v27 = vadd.f32 1.0, %v1824_v24 }
0x1496   :  { %v2220_v29 = vmul.f32 0.5, %v1330_v27 }
0x1497   :  { %v1826_v28 = vpop.eup %1825 }
0x1498   :  { %v1331_v30 = vadd.f32 1.0, %v1826_v28 }
0x149a   :  { %v2224_v37 = vmul.f32 0.5, %v1331_v30 }
0x14f6   :  { %v1339_v33 = vpop.permute.xlu0 %1338 }
0x14f7   :  { %v1344_v5 = vmul.f32 %v1339_v33, %v2220_v29 }
0x14f9   :  { %1348 = vrot.lane.b32.xlu0 %v1344_v5, %s1841_s14 }
0x14fa   :  { %v1341_v38 = vpop.permute.xlu1 %1340 }
0x14fb   :  { %v1345_v42 = vmul.f32 %v1341_v38, %v2224_v37 }
0x14fd   :  { %553 = vperm.xlu0 %1753, %v549_v39   ;;  %1350 = vrot.lane.b32.xlu1 %v1345_v42, %s1841_s14 }
0x1501   :  { %676 = vperm.xlu0 %1753, %v1542_v43   ;;  %671 = vperm.xlu1 %1754, %v1541_v44  }
0x1505   :  { %794 = vperm.xlu0 %1753, %v1545_v45   ;;  %558 = vperm.xlu1 %1754, %v550_v46  }
0x1509   :  { %912 = vperm.xlu0 %1753, %v1548_v47   ;;  %789 = vperm.xlu1 %1754, %v1544_v48  }
0x150d   :  { %1030 = vperm.xlu0 %1753, %v1551_v49   ;;  %907 = vperm.xlu1 %1754, %v1547_v35  }
0x1511   :  { %1148 = vperm.xlu0 %1753, %v1554_v52   ;;  %1025 = vperm.xlu1 %1754, %v1550_v31  }
0x1515   :  { %1266 = vperm.xlu0 %1753, %v1557_v32   ;;  %1143 = vperm.xlu1 %1754, %v1553_v53  }
0x1519   :  { %1261 = vperm.xlu1 %1754, %v1556_v34  }
0x151d   :  { %1379 = vperm.xlu1 %1754, %v1559_v36  }
0x1521   :  { %1384 = vperm.xlu1 %1754, %v1560_v56  }
0x156b   :  { %v1349_v57 = vpop.permute.xlu0 %1348 }
0x156c   :  { %v1354_v58 = vadd.f32 %v1349_v57, %v1322_v16 }
0x156e   :  { %1827 = vtanh.f32 %v1354_v58 }
0x156f   :  { %v1351_v59 = vpop.permute.xlu1 %1350 }
0x1570   :  { %v1355_v60 = vadd.f32 %v1351_v59, %v1323_v20 }
0x1572   :  { %1829 = vtanh.f32 %v1355_v60 }
0x1578   :  { %v554_v4 = vpop.permute.xlu0 %553 }
0x1579   :  { %v561_v24 = vmul.f32 %v554_v4, %v2072_v50 }
0x157b   :  { %v1828_v61 = vpop.eup %1827 }
0x157c   :  { %1362 = vrot.lane.b32.xlu0 %v1828_v61, %s1842_s2  ;;  %v672_v6 = vpop.permute.xlu1 %671  ;;  %v677_v9 = vpop.permute.xlu0 %676 }
0x157d   :  { %v679_v21 = vmul.f32 %v672_v6, %v2096_v25  ;;  %v680_v22 = vmul.f32 %v677_v9, %v2098_v26 }
0x157f   :  { %v1830_v1 = vpop.eup %1829  ;;  %v681_v30 = vadd.f32 %v679_v21, %v561_v24 }
0x1580   :  { %1364 = vrot.lane.b32.xlu0 %v1830_v1, %s1842_s2  ;;  %v559_v10 = vpop.permute.xlu1 %558  ;;  %v795_v11 = vpop.permute.xlu0 %794 }
0x1581   :  { %v562_v17 = vmul.f32 %v559_v10, %v2074_v51  ;;  %v798_v5 = vmul.f32 %v795_v11, %v2122_v8  ;;  %v1391_v51 = vld [vmem:[%s2338_s9] sm:$0xff] }
0x1582   :  { %1742 = vmatprep.subr.mxu1 %v1391_v51 }
0x1583   :  { %v682_v28 = vadd.f32 %v680_v22, %v562_v17  ;;  %1743 = vmatpush3.msra.mxu1 %v1391_v51 }
0x1584   :  { %v790_v12 = vpop.permute.xlu1 %789  ;;  %v913_v13 = vpop.permute.xlu0 %912 }
0x1585   :  { %v797_v27 = vmul.f32 %v790_v12, %v2120_v7  ;;  %v800_v26 = vadd.f32 %v798_v5, %v682_v28  ;;  %v916_v50 = vmul.f32 %v913_v13, %v2146_v55 }
0x1587   :  { %v799_v39 = vadd.f32 %v797_v27, %v681_v30  ;;  %v918_v48 = vadd.f32 %v916_v50, %v800_v26 }
0x1588   :  { %v908_v14 = vpop.permute.xlu1 %907  ;;  %v1031_v15 = vpop.permute.xlu0 %1030 }
0x1589   :  { %v915_v33 = vmul.f32 %v908_v14, %v2144_v54  ;;  %v1358_v54 = vsub.f32 1.0, %v2220_v29  ;;  %v1034_v8 = vmul.f32 %v1031_v15, %v2169_v41  ;;  %v1371_v41 = vmul.f32 %v2224_v37, %v2210_v3 }
0x158b   :  { %v917_v7 = vadd.f32 %v915_v33, %v799_v39  ;;  %v1036_v31 = vadd.f32 %v1034_v8, %v918_v48 }
0x158c   :  { %v1026_v16 = vpop.permute.xlu1 %1025  ;;  %v1149_v20 = vpop.permute.xlu0 %1148 }
0x158d   :  { %v1033_v25 = vmul.f32 %v1026_v16, %v2167_v40  ;;  %v1370_v40 = vmul.f32 %v2220_v29, %v2208_v2  ;;  %v1152_v55 = vmul.f32 %v1149_v20, %v2192_v19 }
0x158f   :  { %v1035_v45 = vadd.f32 %v1033_v25, %v917_v7 }
0x1590   :  { %v1144_v23 = vpop.permute.xlu1 %1143  ;;  %v1267_v38 = vpop.permute.xlu0 %1266 }
0x1591   :  { %v1151_v43 = vmul.f32 %v1144_v23, %v2190_v18  ;;  %v1359_v18 = vsub.f32 1.0, %v2224_v37  ;;  %v1270_v53 = vmul.f32 %v1267_v38, %v2210_v3  ;;  %v1561_v3 = vld [vmem:[%s2339_s10] ss:$0 sm:$0xff] }
0x1593   :  { %v1153_v35 = vadd.f32 %v1151_v43, %v1035_v45 }
0x1594   :  { %v1262_v42 = vpop.permute.xlu1 %1261 }
0x1595   :  { %v1269_v46 = vmul.f32 %v1262_v42, %v2208_v2  ;;  %v1154_v2 = vadd.f32 %v1152_v55, %v1036_v31 }
0x1597   :  { %v1271_v34 = vadd.f32 %v1269_v46, %v1153_v35  ;;  %v1272_v59 = vadd.f32 %v1270_v53, %v1154_v2 }
0x1598   :  { %v1380_v49 = vpop.permute.xlu1 %1379 }
0x159c   :  { %v1385_v58 = vpop.permute.xlu1 %1384 }
0x15ee   :  { %v1363_v44 = vpop.permute.xlu0 %1362 }
0x15ef   :  { %v1368_v47 = vmul.f32 %v1363_v44, %v1358_v54 }
0x15f1   :  { %v1372_v52 = vadd.f32 %v1370_v40, %v1368_v47 }
0x15f2   :  { %v1365_v32 = vpop.permute.xlu0 %1364 }
0x15f3   :  { %v1387_v36 = vmul.f32 %v1380_v49, %v1372_v52  ;;  %v1369_v56 = vmul.f32 %v1365_v32, %v1359_v18 }
0x15f5   :  { %v1373_v29 = vadd.f32 %v1371_v41, %v1369_v56  ;;  %v1389_v57 = vadd.f32 %v1387_v36, %v1271_v34 }
0x15f7   :  { %v1388_v19 = vmul.f32 %v1385_v58, %v1373_v29  ;;  %1404 = vrot.lane.b32.xlu1 %v1389_v57, %s1842_s2 }
0x15f9   :  { %v1390_v60 = vadd.f32 %v1388_v19, %v1272_v59 }
0x15fb   :  { %1406 = vrot.lane.b32.xlu0 %v1390_v60, %s1842_s2 }
0x1669   :  { %v1405_v61 = vpop.permute.xlu1 %1404 }
0x166a   :  { %1744 = vmatprep.mubr.msk.f32.mxu1 %vm278_vm1, %v1405_v61 }
0x166d   :  { %v1407_v37 = vpop.permute.xlu0 %1406 }
0x166e   :  { %1745 = vmatmul.mubr.msk.f32.vlgmr.msra.gmra.mxu1 %vm278_vm1, %v1407_v37 }
0x172e   :  { %v1746_v62 = vpop.f32.mrf.mxu1 }
0x172f   :  { %v1484_v63 = vadd.f32 %v1746_v62, %v1561_v3 }
0x1730   :  { %v1478_v0 = vpop.f32.mrf.mxu1 }
0x1731   :  { %v1479_v1 = vadd.f32 %v1561_v3, %v1478_v0  ;;  %v1491_v4 = vsel %vm1487_vm3, %v1484_v63, -inf }
0x1732   :  { %1492 = vmax.xlane.f32.xlu0 %v1491_v4 }
0x1733   :  { %v1488_v6 = vsel %vm1487_vm3, %v1479_v1, -inf }
0x1734   :  { %1489 = vmax.xlane.f32.xlu1 %v1488_v6 }
0x17bb   :  { %v1493_v9 = vpop.xlane.xlu0 %1492 }
0x17bc   :  { %v1495_v10 = vsub.f32 %v1484_v63, %v1493_v9 }
0x17bd   :  { %v1490_v11 = vpop.xlane.xlu1 %1489 }
0x17be   :  { %v1498_v12 = vmul.f32 1.442695, %v1495_v10  ;;  %v1494_v13 = vsub.f32 %v1479_v1, %v1490_v11 }
0x17c0   :  { %1831 = vpow2.f32 %v1498_v12  ;;  %v1496_v14 = vmul.f32 1.442695, %v1494_v13 }
0x17c2   :  { %1833 = vpow2.f32 %v1496_v14 }
0x17cd   :  { %v1832_v15 = vpop.eup %1831 }
0x17ce   :  { %v1503_v16 = vsel %vm1487_vm3, %v1832_v15, 0.0 }
0x17cf   :  { %v1834_v17 = vpop.eup %1833  ;;  %1504 = vadd.xlane.f32.xlu1 %v1503_v16 }
0x17d0   :  { %v1500_v20 = vsel %vm1487_vm3, %v1834_v17, 0.0 }
0x17d1   :  { %1501 = vadd.xlane.f32.xlu0 %v1500_v20 }
0x1858   :  { %v1505_v21 = vpop.xlane.xlu1 %1504 }
0x1859   :  { %1835 = vrcp.f32 %v1505_v21 }
0x185a   :  { %v1502_v22 = vpop.xlane.xlu0 %1501 }
0x185b   :  { %1837 = vrcp.f32 %v1502_v22 }
0x1866   :  { %v1836_v23 = vpop.eup %1835 }
0x1867   :  { %v1509_v24 = vmul.f32 %v1836_v23, %v1832_v15 }
0x1868   :  { %v1838_v27 = vpop.eup %1837 }
0x1869   :  { %1511 = vst.msk [vmem:[%s2340_s11 + $0x8] sm:$0xff] %vm1487_vm3, %v1509_v24  ;;  %v1508_v28 = vmul.f32 %v1838_v27, %v1834_v17 }
0x186b   :  { %1510 = vst.msk [vmem:[%s2340_s11] sm:$0xff] %vm1487_vm3, %v1508_v28 }

</bundles_post_ra>
